<compile_context>
chip_gen: v7x
topology: tpu7x:2x2x1
jax: 0.10.0
libtpu: 0.0.40
codegen_flags: <defaults>
</compile_context>

<pallas_src>
import math

import jax
import jax.numpy as jnp
from jax.experimental import pallas as pl
from jax.experimental.pallas import tpu as pltpu

LANE = 128  # vreg lane width


def _round_up(n, m):
    return ((n + m - 1) // m) * m


def _mlp_kernel(x_ref,
                w1_ref, b1_ref,
                w2_ref, b2_ref,
                w3_ref, b3_ref,
                w4_ref, b4_ref,
                w5_ref, b5_ref,
                out_ref):
    """Whole-network forward for one batch tile; all parameters are VMEM-resident."""

    def layer(h, w_ref, b_ref, relu):
        acc = jnp.dot(h, w_ref[...],
                      preferred_element_type=jnp.float32,
                      precision=jax.lax.Precision.HIGHEST)
        acc = acc + b_ref[...]
        if relu:
            acc = jnp.maximum(acc, 0.0)
        return acc

    h = x_ref[...]
    h = layer(h, w1_ref, b1_ref, relu=True)     # fc1 + relu
    h = layer(h, w2_ref, b2_ref, relu=True)     # fc2 + relu
    h = layer(h, w3_ref, b3_ref, relu=True)     # fc3 + relu
    h = layer(h, w4_ref, b4_ref, relu=True)     # fc4 + relu
    out = layer(h, w5_ref, b5_ref, relu=False)  # fc5 (identity out_fn)
    out_ref[...] = out.astype(out_ref.dtype)


def prepare_params(params):
    """ONE-TIME parameter prep (call outside the forward path).

    Zero-pads the hidden feature dims up to 128 lanes so the four hidden-layer
    matmuls are lane-dense. Padding is semantics-preserving: the extra hidden
    units are relu(0 + 0) = 0 and feed zero weight rows in the next layer.
    The output feature dim is NOT padded (unpadded (tb, out_dim) writeback).
    Weights stay float32 for exact parity with the PyTorch module.
    """
    hidden_dim = params["w1"].shape[1]
    out_dim = params["w5"].shape[1]
    hp = _round_up(hidden_dim, LANE)

    def pad_to(a, shape):
        return jnp.pad(a, [(0, t - s) for s, t in zip(a.shape, shape)])

    in_dim = params["w1"].shape[0]
    out_feats = [hp, hp, hp, hp, out_dim]
    in_feats = [in_dim, hp, hp, hp, hp]

    operands = []
    for i, (fi, fo) in enumerate(zip(in_feats, out_feats), start=1):
        operands.append(pad_to(params[f"w{i}"], (fi, fo)).astype(jnp.float32))
        operands.append(pad_to(params[f"b{i}"], (1, fo)).astype(jnp.float32))
    return tuple(operands)


def mlp_forward(x, operands, *, tile_b=512):
    """x: (B, input_dim) float32. operands: output of prepare_params()."""
    B, in_dim = x.shape
    hp = operands[0].shape[1]        # padded hidden width
    out_dim = operands[-1].shape[1]  # true output width (unpadded)

    # Pad batch only to a multiple of 8 sublanes (not tile_b).
    bp = _round_up(B, 8)
    if bp != B:
        x = jnp.pad(x, ((0, bp - B), (0, 0)))

    # Batch tile: multiple of 8; ensure >= 2 tiles when possible so the
    # "parallel" batch axis can land on both TensorCores on v7x.
    tb = max(8, min(tile_b, _round_up(pl.cdiv(bp, 2), 8)))
    grid = (pl.cdiv(bp, tb),)  # ragged last tile allowed; extra rows are discarded

    def stream_map(i):
        return (i, 0)

    def const_map(i):
        return (0, 0)

    in_specs = [pl.BlockSpec((tb, in_dim), stream_map)]
    in_specs += [pl.BlockSpec(o.shape, const_map) for o in operands]
    out_spec = pl.BlockSpec((tb, out_dim), stream_map)

    flops = 2 * bp * (in_dim * hp + 3 * hp * hp + hp * out_dim)
    param_bytes = sum(int(o.size) * o.dtype.itemsize for o in operands)
    bytes_accessed = bp * (in_dim + out_dim) * 4 + param_bytes

    out_padded = pl.pallas_call(
        _mlp_kernel,
        out_shape=jax.ShapeDtypeStruct((bp, out_dim), jnp.float32),
        grid=grid,
        in_specs=in_specs,
        out_specs=out_spec,
        compiler_params=pltpu.CompilerParams(
            dimension_semantics=("parallel",),  # shard batch tiles across TCs (v7x)
        ),
        cost_estimate=pl.CostEstimate(
            flops=flops, transcendentals=0, bytes_accessed=bytes_accessed),
    )(x, *operands)

    return out_padded if bp == B else out_padded[:B]


def init_params(key, input_dim, hidden_dim, out_dim):
    """Deterministic init mirroring the PyTorch module's init scheme.

    fc1..fc4 weights use fanin_init (uniform +-1/sqrt(fan_in)); fc5 / biases use
    the default nn.Linear init (also uniform +-1/sqrt(fan_in)). Weights are stored
    already transposed: shape (in_features, out_features).
    """
    dims = [(input_dim, hidden_dim),
            (hidden_dim, hidden_dim),
            (hidden_dim, hidden_dim),
            (hidden_dim, hidden_dim),
            (hidden_dim, out_dim)]
    params = {}
    for i, (fan_in, fan_out) in enumerate(dims, start=1):
        key, kw, kb = jax.random.split(key, 3)
        bound = 1.0 / math.sqrt(fan_in)
        params[f"w{i}"] = jax.random.uniform(
            kw, (fan_in, fan_out), jnp.float32, -bound, bound)
        params[f"b{i}"] = jax.random.uniform(
            kb, (1, fan_out), jnp.float32, -bound, bound)
    return params


if __name__ == "__main__":
    key = jax.random.PRNGKey(0)
    key, kx = jax.random.split(key)

    # Module defaults: hidden_dim=64; small observation/action dims, small batch.
    batch, input_dim, hidden_dim, out_dim = 64, 16, 64, 8
    x = jax.random.normal(kx, (batch, input_dim), jnp.float32)
    params = init_params(key, input_dim, hidden_dim, out_dim)

    # One-time parameter prep, hoisted out of the forward path.
    operands = prepare_params(params)

    out = jax.block_until_ready(mlp_forward(x, operands, tile_b=512))

    # Pure f32 reference of the module's forward semantics.
    def ref_f32(x, p):
        h = x
        for i in range(1, 5):
            h = jnp.maximum(
                jnp.dot(h, p[f"w{i}"], precision=jax.lax.Precision.HIGHEST)
                + p[f"b{i}"], 0.0)
        return jnp.dot(h, p["w5"], precision=jax.lax.Precision.HIGHEST) + p["b5"]

    ref = ref_f32(x, params)
    assert out.shape == (batch, out_dim)
    assert jnp.allclose(out, ref, atol=2e-2, rtol=2e-2)
    # Tight check too (kernel keeps f32 weights, so it should track the f32 ref).
    assert float(jnp.max(jnp.abs(out - ref))) < 1e-2

    print("KERNEL_OK")
</pallas_src>

<mosaic_0001>
module attributes {stable_mosaic.version = 11 : i64} {
  func.func @_mlp_kernel(%arg0: i32, %arg1: memref<32x16xf32, #tpu.memory_space<vmem>>, %arg2: memref<16x128xf32, #tpu.memory_space<vmem>>, %arg3: memref<1x128xf32, #tpu.memory_space<vmem>>, %arg4: memref<128x128xf32, #tpu.memory_space<vmem>>, %arg5: memref<1x128xf32, #tpu.memory_space<vmem>>, %arg6: memref<128x128xf32, #tpu.memory_space<vmem>>, %arg7: memref<1x128xf32, #tpu.memory_space<vmem>>, %arg8: memref<128x128xf32, #tpu.memory_space<vmem>>, %arg9: memref<1x128xf32, #tpu.memory_space<vmem>>, %arg10: memref<128x8xf32, #tpu.memory_space<vmem>>, %arg11: memref<1x8xf32, #tpu.memory_space<vmem>>, %arg12: memref<32x8xf32, #tpu.memory_space<vmem>>) attributes {dimension_semantics = [#tpu.dimension_semantics<parallel>], iteration_bounds = array<i64: 2>, scalar_prefetch = 0 : i64, scratch_operands = 0 : i64, tpu.core_type = #tpu.core_type<tc>, window_params = [{transform_indices = @transform_0, window_bounds = array<i64: 32, 16>}, {pipeline_mode = #tpu.pipeline_mode<synchronous>, transform_indices = @transform_1, window_bounds = array<i64: 16, 128>}, {pipeline_mode = #tpu.pipeline_mode<synchronous>, transform_indices = @transform_2, window_bounds = array<i64: 1, 128>}, {pipeline_mode = #tpu.pipeline_mode<synchronous>, transform_indices = @transform_3, window_bounds = array<i64: 128, 128>}, {pipeline_mode = #tpu.pipeline_mode<synchronous>, transform_indices = @transform_4, window_bounds = array<i64: 1, 128>}, {pipeline_mode = #tpu.pipeline_mode<synchronous>, transform_indices = @transform_5, window_bounds = array<i64: 128, 128>}, {pipeline_mode = #tpu.pipeline_mode<synchronous>, transform_indices = @transform_6, window_bounds = array<i64: 1, 128>}, {pipeline_mode = #tpu.pipeline_mode<synchronous>, transform_indices = @transform_7, window_bounds = array<i64: 128, 128>}, {pipeline_mode = #tpu.pipeline_mode<synchronous>, transform_indices = @transform_8, window_bounds = array<i64: 1, 128>}, {pipeline_mode = #tpu.pipeline_mode<synchronous>, transform_indices = @transform_9, window_bounds = array<i64: 128, 8>}, {pipeline_mode = #tpu.pipeline_mode<synchronous>, transform_indices = @transform_10, window_bounds = array<i64: 1, 8>}, {transform_indices = @transform_11, window_bounds = array<i64: 32, 8>}]} {
    %c0 = arith.constant 0 : index
    %c0_0 = arith.constant 0 : index
    %0 = vector.load %arg1[%c0, %c0_0] : memref<32x16xf32, #tpu.memory_space<vmem>>, vector<32x16xf32>
    %c0_1 = arith.constant 0 : index
    %c0_2 = arith.constant 0 : index
    %1 = vector.load %arg2[%c0_1, %c0_2] : memref<16x128xf32, #tpu.memory_space<vmem>>, vector<16x128xf32>
    %cst = arith.constant dense<0.000000e+00> : vector<32x128xf32>
    %2 = tpu.matmul %0, %1, %cst {dimension_numbers = #tpu.dot_dimension_numbers<[1], [0], [0], [1], [0, 0, 1, 1], [], []>, precision = #tpu.contract_precision<fp32>} : vector<32x16xf32>, vector<16x128xf32>, vector<32x128xf32> -> vector<32x128xf32>
    %c0_3 = arith.constant 0 : index
    %c0_4 = arith.constant 0 : index
    %3 = vector.load %arg3[%c0_3, %c0_4] : memref<1x128xf32, #tpu.memory_space<vmem>>, vector<1x128xf32>
    %4 = vector.broadcast %3 : vector<1x128xf32> to vector<32x128xf32>
    %5 = arith.addf %2, %4 : vector<32x128xf32>
    %cst_5 = arith.constant 0.000000e+00 : f32
    %6 = vector.broadcast %cst_5 : f32 to vector<32x128xf32>
    %7 = arith.maximumf %5, %6 : vector<32x128xf32>
    %c0_6 = arith.constant 0 : index
    %c0_7 = arith.constant 0 : index
    %8 = vector.load %arg4[%c0_6, %c0_7] : memref<128x128xf32, #tpu.memory_space<vmem>>, vector<128x128xf32>
    %cst_8 = arith.constant dense<0.000000e+00> : vector<32x128xf32>
    %9 = tpu.matmul %7, %8, %cst_8 {dimension_numbers = #tpu.dot_dimension_numbers<[1], [0], [0], [1], [0, 0, 1, 1], [], []>, precision = #tpu.contract_precision<fp32>} : vector<32x128xf32>, vector<128x128xf32>, vector<32x128xf32> -> vector<32x128xf32>
    %c0_9 = arith.constant 0 : index
    %c0_10 = arith.constant 0 : index
    %10 = vector.load %arg5[%c0_9, %c0_10] : memref<1x128xf32, #tpu.memory_space<vmem>>, vector<1x128xf32>
    %11 = vector.broadcast %10 : vector<1x128xf32> to vector<32x128xf32>
    %12 = arith.addf %9, %11 : vector<32x128xf32>
    %cst_11 = arith.constant 0.000000e+00 : f32
    %13 = vector.broadcast %cst_11 : f32 to vector<32x128xf32>
    %14 = arith.maximumf %12, %13 : vector<32x128xf32>
    %c0_12 = arith.constant 0 : index
    %c0_13 = arith.constant 0 : index
    %15 = vector.load %arg6[%c0_12, %c0_13] : memref<128x128xf32, #tpu.memory_space<vmem>>, vector<128x128xf32>
    %cst_14 = arith.constant dense<0.000000e+00> : vector<32x128xf32>
    %16 = tpu.matmul %14, %15, %cst_14 {dimension_numbers = #tpu.dot_dimension_numbers<[1], [0], [0], [1], [0, 0, 1, 1], [], []>, precision = #tpu.contract_precision<fp32>} : vector<32x128xf32>, vector<128x128xf32>, vector<32x128xf32> -> vector<32x128xf32>
    %c0_15 = arith.constant 0 : index
    %c0_16 = arith.constant 0 : index
    %17 = vector.load %arg7[%c0_15, %c0_16] : memref<1x128xf32, #tpu.memory_space<vmem>>, vector<1x128xf32>
    %18 = vector.broadcast %17 : vector<1x128xf32> to vector<32x128xf32>
    %19 = arith.addf %16, %18 : vector<32x128xf32>
    %cst_17 = arith.constant 0.000000e+00 : f32
    %20 = vector.broadcast %cst_17 : f32 to vector<32x128xf32>
    %21 = arith.maximumf %19, %20 : vector<32x128xf32>
    %c0_18 = arith.constant 0 : index
    %c0_19 = arith.constant 0 : index
    %22 = vector.load %arg8[%c0_18, %c0_19] : memref<128x128xf32, #tpu.memory_space<vmem>>, vector<128x128xf32>
    %cst_20 = arith.constant dense<0.000000e+00> : vector<32x128xf32>
    %23 = tpu.matmul %21, %22, %cst_20 {dimension_numbers = #tpu.dot_dimension_numbers<[1], [0], [0], [1], [0, 0, 1, 1], [], []>, precision = #tpu.contract_precision<fp32>} : vector<32x128xf32>, vector<128x128xf32>, vector<32x128xf32> -> vector<32x128xf32>
    %c0_21 = arith.constant 0 : index
    %c0_22 = arith.constant 0 : index
    %24 = vector.load %arg9[%c0_21, %c0_22] : memref<1x128xf32, #tpu.memory_space<vmem>>, vector<1x128xf32>
    %25 = vector.broadcast %24 : vector<1x128xf32> to vector<32x128xf32>
    %26 = arith.addf %23, %25 : vector<32x128xf32>
    %cst_23 = arith.constant 0.000000e+00 : f32
    %27 = vector.broadcast %cst_23 : f32 to vector<32x128xf32>
    %28 = arith.maximumf %26, %27 : vector<32x128xf32>
    %c0_24 = arith.constant 0 : index
    %c0_25 = arith.constant 0 : index
    %29 = vector.load %arg10[%c0_24, %c0_25] : memref<128x8xf32, #tpu.memory_space<vmem>>, vector<128x8xf32>
    %cst_26 = arith.constant dense<0.000000e+00> : vector<32x8xf32>
    %30 = tpu.matmul %28, %29, %cst_26 {dimension_numbers = #tpu.dot_dimension_numbers<[1], [0], [0], [1], [0, 0, 1, 1], [], []>, precision = #tpu.contract_precision<fp32>} : vector<32x128xf32>, vector<128x8xf32>, vector<32x8xf32> -> vector<32x8xf32>
    %c0_27 = arith.constant 0 : index
    %c0_28 = arith.constant 0 : index
    %31 = vector.load %arg11[%c0_27, %c0_28] : memref<1x8xf32, #tpu.memory_space<vmem>>, vector<1x8xf32>
    %32 = vector.broadcast %31 : vector<1x8xf32> to vector<32x8xf32>
    %33 = arith.addf %30, %32 : vector<32x8xf32>
    %c0_29 = arith.constant 0 : index
    %c0_30 = arith.constant 0 : index
    %34 = vector.load %arg12[%c0_29, %c0_30] : memref<32x8xf32, #tpu.memory_space<vmem>>, vector<32x8xf32>
    tpu.vector_store %arg12[%c0_29, %c0_30], %33 {strides = array<i32>} : memref<32x8xf32, #tpu.memory_space<vmem>>, vector<32x8xf32>,
    return
  }
  func.func @transform_0(%arg0: i32) -> (i32, i32) {
    %c0_i32 = arith.constant 0 : i32
    %c0_i32_0 = arith.constant 0 : i32
    return %arg0, %c0_i32 : i32, i32
  }
  func.func @transform_1(%arg0: i32) -> (i32, i32) {
    %c0_i32 = arith.constant 0 : i32
    %c0_i32_0 = arith.constant 0 : i32
    %c0_i32_1 = arith.constant 0 : i32
    return %c0_i32, %c0_i32_0 : i32, i32
  }
  func.func @transform_2(%arg0: i32) -> (i32, i32) {
    %c0_i32 = arith.constant 0 : i32
    %c0_i32_0 = arith.constant 0 : i32
    %c0_i32_1 = arith.constant 0 : i32
    return %c0_i32, %c0_i32_0 : i32, i32
  }
  func.func @transform_3(%arg0: i32) -> (i32, i32) {
    %c0_i32 = arith.constant 0 : i32
    %c0_i32_0 = arith.constant 0 : i32
    %c0_i32_1 = arith.constant 0 : i32
    return %c0_i32, %c0_i32_0 : i32, i32
  }
  func.func @transform_4(%arg0: i32) -> (i32, i32) {
    %c0_i32 = arith.constant 0 : i32
    %c0_i32_0 = arith.constant 0 : i32
    %c0_i32_1 = arith.constant 0 : i32
    return %c0_i32, %c0_i32_0 : i32, i32
  }
  func.func @transform_5(%arg0: i32) -> (i32, i32) {
    %c0_i32 = arith.constant 0 : i32
    %c0_i32_0 = arith.constant 0 : i32
    %c0_i32_1 = arith.constant 0 : i32
    return %c0_i32, %c0_i32_0 : i32, i32
  }
  func.func @transform_6(%arg0: i32) -> (i32, i32) {
    %c0_i32 = arith.constant 0 : i32
    %c0_i32_0 = arith.constant 0 : i32
    %c0_i32_1 = arith.constant 0 : i32
    return %c0_i32, %c0_i32_0 : i32, i32
  }
  func.func @transform_7(%arg0: i32) -> (i32, i32) {
    %c0_i32 = arith.constant 0 : i32
    %c0_i32_0 = arith.constant 0 : i32
    %c0_i32_1 = arith.constant 0 : i32
    return %c0_i32, %c0_i32_0 : i32, i32
  }
  func.func @transform_8(%arg0: i32) -> (i32, i32) {
    %c0_i32 = arith.constant 0 : i32
    %c0_i32_0 = arith.constant 0 : i32
    %c0_i32_1 = arith.constant 0 : i32
    return %c0_i32, %c0_i32_0 : i32, i32
  }
  func.func @transform_9(%arg0: i32) -> (i32, i32) {
    %c0_i32 = arith.constant 0 : i32
    %c0_i32_0 = arith.constant 0 : i32
    %c0_i32_1 = arith.constant 0 : i32
    return %c0_i32, %c0_i32_0 : i32, i32
  }
  func.func @transform_10(%arg0: i32) -> (i32, i32) {
    %c0_i32 = arith.constant 0 : i32
    %c0_i32_0 = arith.constant 0 : i32
    %c0_i32_1 = arith.constant 0 : i32
    return %c0_i32, %c0_i32_0 : i32, i32
  }
  func.func @transform_11(%arg0: i32) -> (i32, i32) {
    %c0_i32 = arith.constant 0 : i32
    %c0_i32_0 = arith.constant 0 : i32
    return %arg0, %c0_i32 : i32, i32
  }
}

</mosaic_0001>

<bundles_post_ra>
// kernel: tpu_custom_call.1
= control target key start
LH: loop header
LB: loop body
LE: loop exit
PB: predicated region body
PF: predicated region fallthrough
CT: control target
= control target key end

     0   :  { %16 = vsyncpa [#allocation3], 0  ;;  %s8535_s0 = inlined_call_operand.vmem [shape: f32[64,16], index: 0, kind: input, shape index: {}]   ;;  %s8536_s1 = inlined_call_operand.vmem [shape: f32[16,128], index: 1, kind: input, shape index: {}]   ;;  %s8537_s2 = inlined_call_operand.vmem [shape: f32[1,128], index: 2, kind: input, shape index: {}]   ;;  %s8538_s3 = inlined_call_operand.vmem [shape: f32[128,128], index: 3, kind: input, shape index: {}]   ;;  %s8539_s4 = inlined_call_operand.vmem [shape: f32[1,128], index: 4, kind: input, shape index: {}]   ;;  %s8540_s5 = inlined_call_operand.hbm [shape: f32[128,128], index: 5, kind: input, shape index: {}]   ;;  %s8541_s6 = inlined_call_operand.vmem [shape: f32[1,128], index: 6, kind: input, shape index: {}]   ;;  %s8542_s7 = inlined_call_operand.hbm [shape: f32[128,128], index: 7, kind: input, shape index: {}]   ;;  %s8543_s8 = inlined_call_operand.vmem [shape: f32[1,128], index: 8, kind: input, shape index: {}]   ;;  %s8544_s9 = inlined_call_operand.vmem [shape: f32[128,8], index: 9, kind: input, shape index: {}]   ;;  %s8545_s10 = inlined_call_operand.vmem [shape: f32[1,8], index: 10, kind: input, shape index: {}]   ;;  %s8546_s11 = inlined_call_operand.vmem [shape: f32[64,8], index: 11, kind: output, shape index: {}]  }
   0x1   :  { %17 = vsyncpa [#allocation5], 0  ;;  %s6892_s17 = smov 0  }
   0x2 LB: > { %s4305_s18 = sadd.s32 4294967295, %s6826_s17   ;;  %p4307_p0 = scmp.ge.s32.totalorder %s6826_s17, 1  ;;  %s6826_s17 = sphi %s6892_s17, %s23_s17  }
   0x3   : > { %p290_p1 = scmp.lt.s32.totalorder %s6826_s17, 3  ;;  %s6828_s19 = smov [#allocation2]  }
   0x4   : > { %s314_s20 = sshll.u32 %s6828_s19, 4  ;;  %p6906_p3 = scmp.eq.s32.totalorder %s4305_s18, 0  ;;  %s315_s20 = int_to_ptr.vmem [resolvable:$true] %s314_s20 }
   0x5   : > { %p6900_p2 = pnand %p4307_p0, %p290_p1  ;;  %s6829_s23 = smov [#allocation4]  }
   0x6   : > { %s8615_s22 = scalar_select %p6906_p3, 1, 0 }
   0x7   : > { %s8614_s21 = scalar_select %p6900_p2, 1, 0 }
   0x8   : > { %p6733_p4 = pneg %p6900_p2  ;;  %s330_s24 = sshll.u32 %s6829_s23, 4  ;;  %s6918_s24 = int_to_ptr.vmem [resolvable:$true] %s330_s24 }
   0x9   : > { %s6756_s28 = scalar_lea.hbm %s8540_s5, 2048 }
   0xa   : > { %p6914_p5 = pnand %p6906_p3, %p6733_p4  ;;  %p6757_p6 = scmp.ne.s32.totalorder %s8540_s5, %s6756_s28 }
   0xb   : > { %p6763_p10 = scmp.lt.u32.totalorder %s6756_s28, %s8540_s5 }
   0xc   : > { %p6758_p7 = pneg %p6914_p5 }
   0xe   : > { %p6759_p8 = pnand %p6758_p7, %p6757_p6 }
  0x10   : > { %p6760_p9 = pneg %p6759_p8 }
  0x12   : > { %p6765_p11 = pnand %p6763_p10, %p6760_p9 }
  0x14   : > { %6768 = shalt.err (!%p6765_p11)
}
  0x15   : > { %s6769_s14 = scalar_lea.vmem %s315_s20, 2048  ;;  %p6777_p1 = scmp.lt.s32.totalorder %s315_s20, %s315_s20 }
  0x16   : > { %p6770_p12 = scmp.ne.s32.totalorder %s315_s20, %s6769_s14  ;;  %p6778_p4 = scmp.lt.s32.totalorder %s6769_s14, %s6769_s14 }
  0x18   : > { %p6772_p13 = pnand %p6770_p12, %p6758_p7  ;;  %p6779_p3 = por %p6778_p4, %p6777_p1 }
  0x1a   : > { %p6773_p0 = pneg %p6772_p13 }
  0x1c   : > { %p6780_p2 = pnand %p6779_p3, %p6773_p0 }
  0x1e   : > { %6783 = shalt.err (!%p6780_p2)
}
  0x1f   : > { %s6830_s15 = smov 128   ;;  %s6831_s16 = smov 8  }
  0x20   : > { %6736 = dma.hbm_to_vmem [thread:$0]  (!%p6914_p5), %s8540_s5, 2048, %s315_s20, [#allocation3], %s6830_s15, %s6830_s15, %s6831_s16  }
  0x21   : > { %s6784_s28 = scalar_lea.hbm %s8542_s7, 2048 }
  0x22   : > { %p6785_p6 = scmp.ne.s32.totalorder %s8542_s7, %s6784_s28  ;;  %p6791_p8 = scmp.lt.u32.totalorder %s6784_s28, %s8542_s7 }
  0x24   : > { %p6787_p2 = pnand %p6785_p6, %p6758_p7 }
  0x26   : > { %p6788_p3 = pneg %p6787_p2 }
  0x28   : > { %p6793_p9 = pnand %p6791_p8, %p6788_p3 }
  0x2a   : > { %6796 = shalt.err (!%p6793_p9)
}
  0x2b   : > { %s6797_s20 = scalar_lea.vmem %s6918_s24, 2048  ;;  %p6805_p13 = scmp.lt.s32.totalorder %s6918_s24, %s6918_s24 }
  0x2c   : > { %p6798_p10 = scmp.ne.s32.totalorder %s6918_s24, %s6797_s20  ;;  %p6806_p0 = scmp.lt.s32.totalorder %s6797_s20, %s6797_s20 }
  0x2e   : > { %p6800_p11 = pnand %p6798_p10, %p6758_p7  ;;  %p6807_p1 = por %p6806_p0, %p6805_p13 }
  0x30   : > { %p6801_p12 = pneg %p6800_p11 }
  0x32   : > { %p6808_p4 = pnand %p6807_p1, %p6801_p12 }
  0x34   : > { %6811 = shalt.err (!%p6808_p4)
}
  0x35   : > { %6739 = dma.hbm_to_vmem [thread:$0]  (!%p6914_p5), %s8542_s7, 2048, %s6918_s24, [#allocation5], %s6830_s15, %s6830_s15, %s6831_s16  }
  0x36   : > { %p8617_p6 = scmp.ne.s32.totalorder %s8614_s21, 0 }
  0x38   : > { %364 = sbr.rel (%p8617_p6) target bundleno = 1859 (0x743), region = 64 }
  0x3f   : > { %p8618_p2 = scmp.ne.s32.totalorder %s8615_s22, 0 }
  0x41   : > { %6817 = dma.done.wait (%p8618_p2), [#allocation3], 2048  }
  0x42   : > { %6819 = vsyncadd (%p8618_p2), [#allocation3], 4294965248 }
  0x43   : > { %6821 = dma.done.wait (%p8618_p2), [#allocation5], 2048  }
  0x44   : > { %6823 = vsyncadd (%p8618_p2), [#allocation5], 4294965248  ;;  %s4314_s25 = sshll.u32 %s4305_s18, 2  ;;  %vm433_vm0 = vcmask 130048   ;;  %v424_v0 = vld [vmem:[%s8536_s1] sm:$0xff]  ;;  %v425_v1 = vld [vmem:[%s8536_s1 + $0x8] sm:$0xff] }
  0x45   : > { %p409_p7 = scmp.lt.s32.totalorder %s4314_s25, 7  ;;  %v447_v3 = vand.u32 4294901760, %v424_v0  ;;  %v450_v4 = vand.u32 4294901760, %v425_v1  ;;  %v6998_v13 = vld [vmem:[%s8538_s3] sm:$0xff]  ;;  %v7011_v18 = vld [vmem:[%s8538_s3 + $0x8] sm:$0xff]  ;;  %v7039_v30 = vld [vmem:[%s8538_s3 + $0x10] sm:$0xff] }
  0x46   : > { %v1062_v22 = vand.u32 4294901760, %v6998_v13  ;;  %v1065_v29 = vand.u32 4294901760, %v7011_v18  ;;  %v7049_v35 = vld [vmem:[%s8538_s3 + $0x18] sm:$0xff]  ;;  %v7065_v40 = vld [vmem:[%s8538_s3 + $0x20] sm:$0xff]  ;;  %v7070_v41 = vld [vmem:[%s8538_s3 + $0x28] sm:$0xff]  ;;  %v1068_v45 = vand.u32 4294901760, %v7039_v30 }
  0x47   : > { %s8685_s25 = smov (!%p409_p7, %s4314_s25), 7  ;;  %v7000_v14 = vpack.c.bf16 %v450_v4, %v447_v3  ;;  %v7004_v16 = vsub.f32 %v424_v0, %v447_v3  ;;  %v7006_v17 = vsub.f32 %v425_v1, %v450_v4  ;;  %v1071_v49 = vand.u32 4294901760, %v7049_v35  ;;  %v7081_v50 = vld [vmem:[%s8538_s3 + $0x30] sm:$0xff]  ;;  %v7086_v51 = vld [vmem:[%s8538_s3 + $0x38] sm:$0xff]  ;;  %v1046_v0 = vld [vmem:[%s8538_s3 + $0x40] sm:$0xff] }
  0x48   : > { %s4315_s21 = sshll.u32 %s8685_s25, 3  ;;  %v7060_v39 = vpack.c.bf16 %v1065_v29, %v1062_v22  ;;  %v1074_v54 = vand.u32 4294901760, %v7065_v40  ;;  %v1077_v55 = vand.u32 4294901760, %v7070_v41  ;;  %v1080_v60 = vand.u32 4294901760, %v7081_v50  ;;  %v1047_v1 = vld [vmem:[%s8538_s3 + $0x48] sm:$0xff] }
  0x49   : > { %s412_s16 = scalar_lea.vmem %s8535_s0, %s4315_s21  ;;  %5814 = vmatprep.subr.bf16.mxu0 %v7000_v14  ;;  %v556_v24 = vand.u32 4294901760, %v7004_v16  ;;  %v563_v25 = vand.u32 4294901760, %v7006_v17  ;;  %v5821_v34 = vpack.c.bf16 %v7006_v17, %v7004_v16  ;;  %v7095_v57 = vpack.c.bf16 %v1071_v49, %v1068_v45  ;;  %s418_s23 = scalar_lea.vmem %s8546_s11, %s4315_s21 }
  0x4a   : > { %v420_v2 = vld [vmem:[%s412_s16] sm:$0xff]  ;;  %v421_v6 = vld [vmem:[%s412_s16 + $0x8] sm:$0xff]  ;;  %v422_v7 = vld [vmem:[%s412_s16 + $0x10] sm:$0xff]  ;;  %5816 = vmatpush3.bf16.msra.mxu0 %v7000_v14  ;;  %5838 = vmatprep.subr.bf16.mxu1 %v7060_v39  ;;  %v7101_v59 = vpack.c.bf16 %v1077_v55, %v1074_v54  ;;  %v1083_v61 = vand.u32 4294901760, %v7086_v51  ;;  %v1089_v3 = vand.u32 4294901760, %v1047_v1  ;;  %vm4222_vm1 = vcmask 64512  }
  0x4b   : > { %v435_v5 = vsel %vm433_vm0, %v420_v2, 0  ;;  %v423_v8 = vld [vmem:[%s412_s16 + $0x18] sm:$0xff]  ;;  %v438_v10 = vsel %vm433_vm0, %v421_v6, 0  ;;  %v441_v11 = vsel %vm433_vm0, %v422_v7, 0  ;;  %v557_v32 = vsub.f32 %v7004_v16, %v556_v24  ;;  %5840 = vmatpush3.bf16.msra.mxu1 %v7060_v39 }
  0x4c   : > { %v6993_v9 = vand.u32 4294901760, %v435_v5  ;;  %v444_v12 = vsel %vm433_vm0, %v423_v8, 0  ;;  %v7002_v15 = vand.u32 4294901760, %v438_v10  ;;  %v7016_v20 = vand.u32 4294901760, %v441_v11  ;;  %5842 = vmatprep.subr.bf16.mxu1 %v7095_v57  ;;  %v1049_v6 = vld [vmem:[%s8538_s3 + $0x58] sm:$0xff] }
  0x4d   : > { %v7018_v21 = vand.u32 4294901760, %v444_v12  ;;  %v564_v33 = vsub.f32 %v7006_v17, %v563_v25  ;;  %v558_v43 = vand.u32 4294901760, %v557_v32  ;;  %v7112_v62 = vpack.c.bf16 %v1083_v61, %v1080_v60 }
  0x4e   : > { %v7014_v19 = vsub.f32 %v435_v5, %v6993_v9  ;;  %v7023_v23 = vsub.f32 %v438_v10, %v7002_v15  ;;  %v7030_v27 = vsub.f32 %v441_v11, %v7016_v20  ;;  %v5829_v63 = vpack.c.bf16 %v563_v25, %v556_v24  ;;  %v1048_v5 = vld [vmem:[%s8538_s3 + $0x50] sm:$0xff]  ;;  %v1050_v10 = vld [vmem:[%s8538_s3 + $0x60] sm:$0xff]  ;;  %v1051_v11 = vld [vmem:[%s8538_s3 + $0x68] sm:$0xff] }
  0x4f   : > { %v7033_v28 = vsub.f32 %v444_v12, %v7018_v21  ;;  %v565_v44 = vand.u32 4294901760, %v564_v33  ;;  %5844 = vmatpush3.bf16.msra.mxu1 %v7095_v57  ;;  %v1086_v2 = vand.u32 4294901760, %v1046_v0  ;;  %v1092_v7 = vand.u32 4294901760, %v1048_v5 }
  0x50   : > { %v515_v26 = vand.u32 4294901760, %v7014_v19  ;;  %v525_v31 = vand.u32 4294901760, %v7023_v23  ;;  %v535_v37 = vand.u32 4294901760, %v7030_v27  ;;  %5846 = vmatprep.subr.bf16.mxu1 %v7101_v59  ;;  %v1095_v8 = vand.u32 4294901760, %v1049_v6 }
  0x51   : > { %v545_v38 = vand.u32 4294901760, %v7033_v28  ;;  %v5817_v53 = vpack.c.bf16 %v565_v44, %v558_v43  ;;  %v7145_v4 = vpack.c.bf16 %v1089_v3, %v1086_v2  ;;  %v1098_v12 = vand.u32 4294901760, %v1050_v10 }
  0x52   : > { %v516_v36 = vsub.f32 %v7014_v19, %v515_v26  ;;  %v526_v42 = vsub.f32 %v7023_v23, %v525_v31  ;;  %v536_v47 = vsub.f32 %v7030_v27, %v535_v37  ;;  %v7170_v16 = vsub.f32 %v6998_v13, %v1062_v22 }
  0x53   : > { %v546_v48 = vsub.f32 %v7033_v28, %v545_v38  ;;  %5818 = vmatprep.subr.bf16.mxu0 %v5817_v53  ;;  %5848 = vmatpush3.bf16.msra.mxu1 %v7101_v59  ;;  %v7175_v17 = vsub.f32 %v7011_v18, %v1065_v29  ;;  %v7200_v29 = vsub.f32 %v1046_v0, %v1086_v2 }
  0x54   : > { %v517_v46 = vand.u32 4294901760, %v516_v36  ;;  %v527_v52 = vand.u32 4294901760, %v526_v42  ;;  %v537_v56 = vand.u32 4294901760, %v536_v47  ;;  %5850 = vmatprep.subr.bf16.mxu1 %v7112_v62  ;;  %v8569_v13 = vand.u32 4294901760, %v7170_v16 }
  0x55   : > { %v547_v58 = vand.u32 4294901760, %v546_v48  ;;  %v8567_v22 = vand.u32 4294901760, %v7175_v17  ;;  %v8557_v32 = vand.u32 4294901760, %v7200_v29 }
  0x56   : > { %4845 = vmatprep.mubr.f32.mxu0 %v517_v46  ;;  %v1186_v24 = vsub.f32 %v7170_v16, %v8569_v13  ;;  %v1843_v13 = vld [vmem:[#allocation2 + $0x40] sm:$0xff] }
  0x57   : > { %4846 = vmatmul.mubr.f32.vlgmr.msra.gmra.mrb[0].mxu0 %v527_v52  ;;  %5852 = vmatpush3.bf16.msra.mxu1 %v7112_v62  ;;  %v1193_v25 = vsub.f32 %v7175_v17, %v8567_v22 }
  0x58   : > { %5820 = vmatpush3.bf16.msra.mxu0 %v5817_v53  ;;  %4848 = vmatprep.mubr.f32.mxu0 %v537_v56  ;;  %v7226_v53 = vsub.f32 %v1050_v10, %v1098_v12 }
  0x59   : > { %5822 = vmatprep.subr.bf16.mxu0 %v5821_v34  ;;  %5854 = vmatprep.subr.bf16.mxu1 %v7145_v4 }
  0x5a   : > { %v8553_v0 = vand.u32 4294901760, %v7226_v53 }
  0x5b   : > { %4849 = vmatmul.mubr.f32.gmra.mrb[2].mxu0 %v547_v58  ;;  %5856 = vmatpush3.bf16.msra.mxu1 %v7145_v4 }
  0x5c   : > { %4855 = vmatprep.mubr.f32.mxu0 %v6993_v9 }
  0x5f   : > { %4856 = vmatmul.mubr.f32.vlgmr.msra.gmra.mrb[0].mxu0 %v7002_v15 }
  0x60   : > { %5824 = vmatpush3.bf16.msra.mxu0 %v5821_v34  ;;  %4858 = vmatprep.mubr.f32.mxu0 %v7016_v20  ;;  %v1242_v34 = vsub.f32 %v7200_v29, %v8557_v32 }
  0x61   : > { %5826 = vmatprep.subr.bf16.mxu0 %v7000_v14 }
  0x62   : > { %v1243_v42 = vand.u32 4294901760, %v1242_v34 }
  0x63   : > { %4859 = vmatmul.mubr.f32.gmra.mrb[2].mxu0 %v7018_v21 }
  0x64   : > { %4865 = vmatprep.mubr.f32.mxu0 %v7014_v19  ;;  %v1052_v19 = vld [vmem:[%s8538_s3 + $0x70] sm:$0xff] }
  0x67   : > { %4866 = vmatmul.mubr.f32.vlgmr.msra.gmra.mrb[0].mxu0 %v7023_v23 }
  0x68   : > { %5828 = vmatpush3.bf16.msra.mxu0 %v7000_v14  ;;  %4868 = vmatprep.mubr.f32.mxu0 %v7030_v27  ;;  %v1194_v27 = vand.u32 4294901760, %v1193_v25  ;;  %v7258_v25 = vpack.c.bf16 %v7175_v17, %v7170_v16 }
  0x69   : > { %5830 = vmatprep.subr.bf16.mxu0 %v5829_v63 }
  0x6b   : > { %4869 = vmatmul.mubr.f32.gmra.mrb[2].mxu0 %v7033_v28 }
  0x6c   : > { %4875 = vmatprep.mubr.f32.mxu0 %v515_v26  ;;  %v1187_v26 = vand.u32 4294901760, %v1186_v24 }
  0x6e   : > { %v7197_v28 = vpack.c.bf16 %v1194_v27, %v1187_v26 }
  0x6f   : > { %4876 = vmatmul.mubr.f32.vlgmr.msra.gmra.mrb[0].mxu0 %v525_v31  ;;  %v7202_v31 = vsub.f32 %v1047_v1, %v1089_v3  ;;  %v1270_v3 = vsub.f32 %v7226_v53, %v8553_v0 }
  0x70   : > { %5832 = vmatpush3.bf16.msra.mxu0 %v5829_v63  ;;  %4878 = vmatprep.mubr.f32.mxu0 %v535_v37  ;;  %v7212_v37 = vsub.f32 %v1048_v5, %v1092_v7 }
  0x71   : > { %5834 = vmatprep.subr.bf16.mxu0 %v7000_v14  ;;  %v8556_v33 = vand.u32 4294901760, %v7202_v31  ;;  %v7262_v26 = vpack.c.bf16 %v7202_v31, %v7200_v29 }
  0x72   : > { %v8555_v44 = vand.u32 4294901760, %v7212_v37 }
  0x73   : > { %4879 = vmatmul.mubr.f32.gmra.mrb[2].mxu0 %v545_v38  ;;  %v1249_v36 = vsub.f32 %v7202_v31, %v8556_v33  ;;  %v7214_v38 = vsub.f32 %v1049_v6, %v1095_v8 }
  0x74   : > { %4885 = vmatprep.mubr.f32.mxu0 %v6993_v9  ;;  %v1256_v48 = vsub.f32 %v7212_v37, %v8555_v44 }
  0x75   : > { %v1250_v43 = vand.u32 4294901760, %v1249_v36  ;;  %v8554_v46 = vand.u32 4294901760, %v7214_v38  ;;  %v7266_v27 = vpack.c.bf16 %v7214_v38, %v7212_v37 }
  0x76   : > { %v1257_v58 = vand.u32 4294901760, %v1256_v48  ;;  %v4318_v48 = vld [vmem:[%s8537_s2] ss:$0 sm:$0xff] }
  0x77   : > { %4886 = vmatmul.mubr.f32.vlgmr.msra.gmra.mrb[0].mxu0 %v7002_v15  ;;  %v7218_v47 = vpack.c.bf16 %v1250_v43, %v1243_v42  ;;  %v1263_v52 = vsub.f32 %v7214_v38, %v8554_v46  ;;  %v7279_v42 = vsub.f32 %v7039_v30, %v1068_v45  ;;  %v7284_v43 = vsub.f32 %v7049_v35, %v1071_v49 }
  0x78   : > { %5836 = vmatpush3.bf16.msra.mxu0 %v7000_v14  ;;  %4888 = vmatprep.mubr.f32.mxu0 %v7016_v20  ;;  %v1101_v14 = vand.u32 4294901760, %v1051_v11  ;;  %v7294_v30 = vsub.f32 %v7065_v40, %v1074_v54  ;;  %v7299_v35 = vsub.f32 %v7070_v41, %v1077_v55 }
  0x79   : > { %v1264_v63 = vand.u32 4294901760, %v1263_v52 }
  0x7a   : > { %v7228_v56 = vsub.f32 %v1051_v11, %v1101_v14  ;;  %v8559_v41 = vand.u32 4294901760, %v7294_v30  ;;  %v8558_v55 = vand.u32 4294901760, %v7299_v35 }
  0x7b   : > { %4889 = vmatmul.mubr.f32.gmra.mrb[2].mxu0 %v7018_v21  ;;  %v7232_v2 = vpack.c.bf16 %v1264_v63, %v1257_v58 }
  0x7c   : > { %4895 = vmatprep.mubr.f32.mxu0 %v6993_v9  ;;  %v7155_v9 = vpack.c.bf16 %v1095_v8, %v1092_v7  ;;  %v8552_v1 = vand.u32 4294901760, %v7228_v56  ;;  %v1271_v8 = vand.u32 4294901760, %v1270_v3  ;;  %v7270_v34 = vpack.c.bf16 %v7228_v56, %v7226_v53 }
  0x7d   : > { %v8566_v3 = vand.u32 4294901760, %v7279_v42 }
  0x7e   : > { %5858 = vmatprep.subr.bf16.mxu1 %v7155_v9  ;;  %v1277_v7 = vsub.f32 %v7228_v56, %v8552_v1 }
  0x7f   : > { %4896 = vmatmul.mubr.f32.vlgmr.msra.gmra.mrb[0].mxu0 %v7002_v15  ;;  %5860 = vmatpush3.bf16.msra.mxu1 %v7155_v9  ;;  %v7165_v15 = vpack.c.bf16 %v1101_v14, %v1098_v12 }
  0x80   : > { %4898 = vmatprep.mubr.f32.mxu0 %v7016_v20  ;;  %v1053_v20 = vld [vmem:[%s8538_s3 + $0x78] sm:$0xff]  ;;  %v1278_v12 = vand.u32 4294901760, %v1277_v7  ;;  %v8565_v7 = vand.u32 4294901760, %v7284_v43 }
  0x81   : > { %5862 = vmatprep.subr.bf16.mxu1 %v7165_v15  ;;  %v1107_v23 = vand.u32 4294901760, %v1053_v20 }
  0x82   : > { %v1207_v40 = vsub.f32 %v7284_v43, %v8565_v7 }
  0x83   : > { %4899 = vmatmul.mubr.f32.gmra.mrb[2].mxu0 %v7018_v21  ;;  %v1104_v21 = vand.u32 4294901760, %v1052_v19  ;;  %5864 = vmatpush3.bf16.msra.mxu1 %v7165_v15  ;;  %v7239_v6 = vsub.f32 %v1053_v20, %v1107_v23  ;;  %v7252_v20 = vpack.c.bf16 %v1278_v12, %v1271_v8 }
  0x85   : > { %v7187_v18 = vpack.c.bf16 %v1107_v23, %v1104_v21  ;;  %v7237_v5 = vsub.f32 %v1052_v19, %v1104_v21  ;;  %v8550_v11 = vand.u32 4294901760, %v7239_v6 }
  0x87   : > { %5866 = vmatprep.subr.bf16.mxu1 %v7187_v18  ;;  %v8551_v10 = vand.u32 4294901760, %v7237_v5  ;;  %v1291_v19 = vsub.f32 %v7239_v6, %v8550_v11  ;;  %v7274_v36 = vpack.c.bf16 %v7239_v6, %v7237_v5 }
  0x88   : > { %5868 = vmatpush3.bf16.msra.mxu1 %v7187_v18 }
  0x89   : > { %5870 = vmatprep.subr.bf16.mxu1 %v7197_v28  ;;  %v1284_v14 = vsub.f32 %v7237_v5, %v8551_v10  ;;  %v1292_v23 = vand.u32 4294901760, %v1291_v19 }
  0x8b   : > { %v1285_v21 = vand.u32 4294901760, %v1284_v14 }
  0x8d   : > { %v7254_v24 = vpack.c.bf16 %v1292_v23, %v1285_v21  ;;  %v1200_v23 = vsub.f32 %v7279_v42, %v8566_v3 }
  0x8f   : > { %v1201_v10 = vand.u32 4294901760, %v1200_v23 }
 0x152   : > { %v4897_v52 = vpop.f32.mrb[0].mxu0 }
 0x153   : > { %v6605_v58 = vadd.f32 %v4897_v52, %v4318_v48  ;;  %v1012_v63 = vpop.f32.mrb[1].mxu0 }
 0x154   : > { %v6606_v8 = vadd.f32 %v4318_v48, %v1012_v63 }
 0x155   : > { %v1035_v45 = vmax.f32 %v6605_v58, 0.0 }
 0x156   : > { %v1034_v49 = vmax.f32 %v6606_v8, 0.0  ;;  %v4900_v12 = vpop.f32.mrb[2].mxu0  ;;  %v7319_v8 = vsub.f32 %v7081_v50, %v1080_v60  ;;  %v1214_v60 = vsub.f32 %v7294_v30, %v8559_v41 }
 0x157   : > { %v7301_v14 = vand.u32 4294901760, %v1035_v45  ;;  %v6607_v19 = vadd.f32 %v4900_v12, %v4318_v48  ;;  %v1024_v21 = vpop.f32.mrb[3].mxu0  ;;  %v7324_v12 = vsub.f32 %v7086_v51, %v1083_v61  ;;  %v1221_v51 = vsub.f32 %v7299_v35, %v8558_v55 }
 0x158   : > { %v7309_v54 = vand.u32 4294901760, %v1034_v49  ;;  %v6608_v52 = vadd.f32 %v4318_v48, %v1024_v21  ;;  %v8563_v23 = vand.u32 4294901760, %v7319_v8  ;;  %v1215_v32 = vand.u32 4294901760, %v1214_v60 }
 0x159   : > { %v7314_v58 = vsub.f32 %v1035_v45, %v7301_v14  ;;  %v1037_v63 = vmax.f32 %v6607_v19, 0.0  ;;  %v1208_v19 = vand.u32 4294901760, %v1207_v40  ;;  %v8562_v40 = vand.u32 4294901760, %v7324_v12 }
 0x15a   : > { %v7327_v48 = vsub.f32 %v1034_v49, %v7309_v54  ;;  %v1036_v21 = vmax.f32 %v6608_v52, 0.0  ;;  %v1222_v55 = vand.u32 4294901760, %v1221_v51 }
 0x15b   : > { %v7329_v11 = vand.u32 4294901760, %v1037_v63  ;;  %v8560_v45 = vand.u32 4294901760, %v7314_v58  ;;  %v5873_v46 = vpack.c.bf16 %v1208_v19, %v1201_v10  ;;  %v1235_v10 = vsub.f32 %v7324_v12, %v8562_v40 }
 0x15c   : > { %v7332_v1 = vand.u32 4294901760, %v1036_v21  ;;  %v8571_v50 = vand.u32 4294901760, %v7327_v48  ;;  %v5877_v51 = vpack.c.bf16 %v1222_v55, %v1215_v32  ;;  %v5909_v32 = vpack.c.bf16 %v7299_v35, %v7294_v30  ;;  %v1839_v55 = vld [vmem:[#allocation2 + $0x20] sm:$0xff] }
 0x15d   : > { %v7342_v61 = vsub.f32 %v1037_v63, %v7329_v11  ;;  %v1155_v49 = vsub.f32 %v7314_v58, %v8560_v45 }
 0x15e   : > { %v7350_v52 = vsub.f32 %v1036_v21, %v7332_v1  ;;  %v1145_v0 = vsub.f32 %v7327_v48, %v8571_v50  ;;  %v1228_v21 = vsub.f32 %v7319_v8, %v8563_v23 }
 0x15f   : > { %v8561_v44 = vand.u32 4294901760, %v7342_v61  ;;  %v1156_v41 = vand.u32 4294901760, %v1155_v49 }
 0x160   : > { %v1146_v63 = vand.u32 4294901760, %v1145_v0  ;;  %v8564_v33 = vand.u32 4294901760, %v7350_v52  ;;  %v1229_v49 = vand.u32 4294901760, %v1228_v21 }
 0x161   : > { %v1175_v45 = vsub.f32 %v7342_v61, %v8561_v44  ;;  %v1236_v44 = vand.u32 4294901760, %v1235_v10  ;;  %v1871_v10 = vand.u32 4294901760, %v1839_v55 }
 0x162   : > { %4933 = vmatprep.mubr.f32.mxu1 %v1146_v63  ;;  %v1165_v0 = vsub.f32 %v7350_v52, %v8564_v33 }
 0x163   : > { %4934 = vmatmul.mubr.f32.vlgmr.msra.gmra.mrb[0].mxu1 %v1156_v41  ;;  %v1176_v60 = vand.u32 4294901760, %v1175_v45  ;;  %v5881_v63 = vpack.c.bf16 %v1236_v44, %v1229_v49  ;;  %v1835_v44 = vld [vmem:[#allocation2] sm:$0xff]  ;;  %v1840_v45 = vld [vmem:[#allocation2 + $0x28] sm:$0xff]  ;;  %v7405_v7 = vsub.f32 %v1839_v55, %v1871_v10 }
 0x164   : > { %5872 = vmatpush3.bf16.msra.mxu1 %v7197_v28  ;;  %v1166_v19 = vand.u32 4294901760, %v1165_v0  ;;  %v5905_v28 = vpack.c.bf16 %v7284_v43, %v7279_v42  ;;  %v1874_v0 = vand.u32 4294901760, %v1840_v45 }
 0x165   : > { %5874 = vmatprep.subr.bf16.mxu1 %v5873_v46  ;;  %8623 = vst [vmem:[#allocation12_spill] sm:$0xff] %v7405_v7 }
 0x166   : > { %4936 = vmatprep.mubr.f32.mxu1 %v1166_v19  ;;  %v7403_v33 = vpack.c.bf16 %v1874_v0, %v1871_v10 }
 0x167   : > { %4937 = vmatmul.mubr.f32.gmra.mrb[2].mxu1 %v1176_v60 }
 0x168   : > { %5876 = vmatpush3.bf16.msra.mxu1 %v5873_v46  ;;  %4971 = vmatprep.mubr.f32.mxu1 %v7309_v54  ;;  %v1836_v46 = vld [vmem:[#allocation2 + $0x8] sm:$0xff] }
 0x169   : > { %5878 = vmatprep.subr.bf16.mxu1 %v5877_v51 }
 0x16c   : > { %5880 = vmatpush3.bf16.msra.mxu1 %v5877_v51 }
 0x16d   : > { %5882 = vmatprep.subr.bf16.mxu1 %v5881_v63 }
 0x170   : > { %5884 = vmatpush3.bf16.msra.mxu1 %v5881_v63  ;;  %v1841_v63 = vld [vmem:[#allocation2 + $0x30] sm:$0xff] }
 0x171   : > { %5886 = vmatprep.subr.bf16.mxu1 %v7218_v47 }
 0x174   : > { %5888 = vmatpush3.bf16.msra.mxu1 %v7218_v47  ;;  %v1837_v47 = vld [vmem:[#allocation2 + $0x10] sm:$0xff] }
 0x175   : > { %5890 = vmatprep.subr.bf16.mxu1 %v7232_v2  ;;  %v1865_v41 = vand.u32 4294901760, %v1837_v47 }
 0x177   : > { %v7397_v49 = vsub.f32 %v1837_v47, %v1865_v41 }
 0x178   : > { %5892 = vmatpush3.bf16.msra.mxu1 %v7232_v2  ;;  %v1859_v2 = vand.u32 4294901760, %v1835_v44 }
 0x179   : > { %5894 = vmatprep.subr.bf16.mxu1 %v7252_v20  ;;  %8621 = vst [vmem:[#allocation10_spill] sm:$0xff] %v7397_v49 }
 0x17a   : > { %v7393_v60 = vsub.f32 %v1835_v44, %v1859_v2 }
 0x17c   : > { %5896 = vmatpush3.bf16.msra.mxu1 %v7252_v20  ;;  %v1862_v20 = vand.u32 4294901760, %v1836_v46  ;;  %8619 = vst [vmem:[#allocation8_spill] sm:$0xff] %v7393_v60  ;;  %v8568_v3 = vand.u32 4294901760, %v7393_v60 }
 0x17d   : > { %5898 = vmatprep.subr.bf16.mxu1 %v7254_v24 }
 0x17e   : > { %v7391_v19 = vpack.c.bf16 %v1862_v20, %v1859_v2  ;;  %v7395_v51 = vsub.f32 %v1836_v46, %v1862_v20  ;;  %v8574_v46 = vand.u32 4294901760, %v7397_v49  ;;  %v7410_v2 = vsub.f32 %v1840_v45, %v1874_v0 }
 0x17f   : > { %v8582_v20 = vand.u32 4294901760, %v7405_v7  ;;  %v1983_v55 = vsub.f32 %v7393_v60, %v8568_v3  ;;  %v1845_v60 = vld [vmem:[#allocation2 + $0x50] sm:$0xff] }
 0x180   : > { %5900 = vmatpush3.bf16.msra.mxu1 %v7254_v24  ;;  %v1838_v24 = vld [vmem:[#allocation2 + $0x18] sm:$0xff]  ;;  %8620 = vst [vmem:[#allocation9_spill] sm:$0xff] %v7395_v51  ;;  %v8570_v44 = vand.u32 4294901760, %v7395_v51  ;;  %8624 = vst [vmem:[#allocation13_spill] sm:$0xff] %v7410_v2  ;;  %v1997_v45 = vsub.f32 %v7397_v49, %v8574_v46 }
 0x181   : > { %5902 = vmatprep.subr.bf16.mxu1 %v7258_v25  ;;  %v1868_v21 = vand.u32 4294901760, %v1838_v24  ;;  %v2011_v0 = vsub.f32 %v7405_v7, %v8582_v20  ;;  %v1984_v50 = vand.u32 4294901760, %v1983_v55 }
 0x182   : > { %v1998_v46 = vand.u32 4294901760, %v1997_v45 }
 0x183   : > { %4972 = vmatmul.mubr.f32.vlgmr.msra.gmra.mrb[0].mxu1 %v7301_v14  ;;  %v7399_v40 = vpack.c.bf16 %v1868_v21, %v1865_v41  ;;  %v7401_v23 = vsub.f32 %v1838_v24, %v1868_v21  ;;  %v1877_v24 = vand.u32 4294901760, %v1841_v63  ;;  %v8586_v21 = vand.u32 4294901760, %v7410_v2 }
 0x184   : > { %4974 = vmatprep.mubr.f32.mxu1 %v7332_v1  ;;  %5904 = vmatpush3.bf16.msra.mxu1 %v7258_v25  ;;  %v5913_v25 = vpack.c.bf16 %v7324_v12, %v7319_v8 }
 0x185   : > { %5906 = vmatprep.subr.bf16.mxu1 %v5905_v28  ;;  %8622 = vst [vmem:[#allocation11_spill] sm:$0xff] %v7401_v23  ;;  %v8579_v47 = vand.u32 4294901760, %v7401_v23  ;;  %v7432_v3 = vsub.f32 %v1841_v63, %v1877_v24  ;;  %v2018_v49 = vsub.f32 %v7410_v2, %v8586_v21  ;;  %v1846_v63 = vld [vmem:[#allocation2 + $0x58] sm:$0xff]  ;;  %v1889_v2 = vand.u32 4294901760, %v1845_v60 }
 0x187   : > { %4975 = vmatmul.mubr.f32.gmra.mrb[2].mxu1 %v7329_v11  ;;  %v2004_v10 = vsub.f32 %v7401_v23, %v8579_v47  ;;  %v2012_v23 = vand.u32 4294901760, %v2011_v0  ;;  %v2024_v20 = vand.u32 4294901760, %v7432_v3 }
 0x188   : > { %5908 = vmatpush3.bf16.msra.mxu1 %v5905_v28  ;;  %5009 = vmatprep.mubr.f32.mxu1 %v7327_v48  ;;  %v1842_v28 = vld [vmem:[#allocation2 + $0x38] sm:$0xff] }
 0x189   : > { %5910 = vmatprep.subr.bf16.mxu1 %v5909_v32  ;;  %v1880_v41 = vand.u32 4294901760, %v1842_v28  ;;  %v2005_v47 = vand.u32 4294901760, %v2004_v10  ;;  %v2025_v45 = vsub.f32 %v7432_v3, %v2024_v20 }
 0x18b   : > { %v7430_v22 = vpack.c.bf16 %v1880_v41, %v1877_v24  ;;  %v7439_v7 = vsub.f32 %v1842_v28, %v1880_v41 }
 0x18c   : > { %5912 = vmatpush3.bf16.msra.mxu1 %v5909_v32  ;;  %v1990_v32 = vsub.f32 %v7395_v51, %v8570_v44  ;;  %v1844_v44 = vld [vmem:[#allocation2 + $0x48] sm:$0xff] }
 0x18d   : > { %5914 = vmatprep.subr.bf16.mxu1 %v5913_v25  ;;  %8625 = vst [vmem:[#allocation14_spill] sm:$0xff] %v7430_v22  ;;  %v2019_v22 = vand.u32 4294901760, %v2018_v49  ;;  %v1886_v55 = vand.u32 4294901760, %v1844_v44  ;;  %v2031_v21 = vand.u32 4294901760, %v7439_v7 }
 0x18e   : > { %v1991_v51 = vand.u32 4294901760, %v1990_v32  ;;  %v6065_v32 = vpack.c.bf16 %v2005_v47, %v1998_v46  ;;  %v7456_v46 = vsub.f32 %v1845_v60, %v1889_v2 }
 0x18f   : > { %v6069_v10 = vpack.c.bf16 %v2019_v22, %v2012_v23  ;;  %v7454_v49 = vsub.f32 %v1844_v44, %v1886_v55 }
 0x190   : > { %5916 = vmatpush3.bf16.msra.mxu1 %v5913_v25  ;;  %v6061_v24 = vpack.c.bf16 %v1991_v51, %v1984_v50  ;;  %v1883_v25 = vand.u32 4294901760, %v1843_v13  ;;  %v1892_v50 = vand.u32 4294901760, %v1846_v63  ;;  %v2032_v51 = vsub.f32 %v7439_v7, %v2031_v21 }
 0x191   : > { %5918 = vmatprep.subr.bf16.mxu1 %v7262_v26  ;;  %v2045_v41 = vand.u32 4294901760, %v7454_v49 }
 0x192   : > { %6062 = vmatprep.subr.bf16.mxu0 %v6061_v24  ;;  %v7446_v0 = vpack.c.bf16 %v1886_v55, %v1883_v25  ;;  %v7448_v28 = vsub.f32 %v1843_v13, %v1883_v25  ;;  %v7459_v23 = vpack.c.bf16 %v1892_v50, %v1889_v2  ;;  %v7461_v13 = vsub.f32 %v1846_v63, %v1892_v50 }
 0x193   : > { %6064 = vmatpush3.bf16.msra.mxu0 %v6061_v24  ;;  %v2033_v47 = vand.u32 4294901760, %v2032_v51  ;;  %v2052_v24 = vand.u32 4294901760, %v7456_v46  ;;  %v2046_v2 = vsub.f32 %v7454_v49, %v2045_v41 }
 0x194   : > { %5920 = vmatpush3.bf16.msra.mxu1 %v7262_v26  ;;  %6066 = vmatprep.subr.bf16.mxu0 %v6065_v32  ;;  %v2026_v26 = vand.u32 4294901760, %v2025_v45  ;;  %v2038_v22 = vand.u32 4294901760, %v7448_v28  ;;  %v2059_v44 = vand.u32 4294901760, %v7461_v13 }
 0x195   : > { %5922 = vmatprep.subr.bf16.mxu1 %v7266_v27  ;;  %v2047_v45 = vand.u32 4294901760, %v2046_v2 }
 0x196   : > { %v2039_v60 = vsub.f32 %v7448_v28, %v2038_v22  ;;  %v6073_v63 = vpack.c.bf16 %v2033_v47, %v2026_v26  ;;  %v2060_v55 = vsub.f32 %v7461_v13, %v2059_v44  ;;  %v8629_v47 = vand.u32 4294901760, %v7279_v42 }
 0x197   : > { %6068 = vmatpush3.bf16.msra.mxu0 %v6065_v32  ;;  %v8636_v42 = vand.u32 4294901760, %v7319_v8  ;;  %v8642_v8 = vand.u32 4294901760, %v7226_v53 }
 0x198   : > { %5924 = vmatpush3.bf16.msra.mxu1 %v7266_v27  ;;  %6070 = vmatprep.subr.bf16.mxu0 %v6069_v10  ;;  %v2040_v25 = vand.u32 4294901760, %v2039_v60  ;;  %v2053_v27 = vsub.f32 %v7456_v46, %v2052_v24  ;;  %v2061_v51 = vand.u32 4294901760, %v2060_v55  ;;  %v8630_v60 = vand.u32 4294901760, %v7284_v43 }
 0x199   : > { %5926 = vmatprep.subr.bf16.mxu1 %v7270_v34  ;;  %v8635_v55 = vand.u32 4294901760, %v7342_v61  ;;  %v8637_v43 = vand.u32 4294901760, %v7324_v12  ;;  %v8643_v12 = vand.u32 4294901760, %v7228_v56 }
 0x19a   : > { %v6077_v32 = vpack.c.bf16 %v2047_v45, %v2040_v25  ;;  %v2054_v50 = vand.u32 4294901760, %v2053_v27  ;;  %v5969_v2 = vpack.c.bf16 %v8630_v60, %v8629_v47  ;;  %v8632_v25 = vand.u32 4294901760, %v7350_v52 }
 0x19b   : > { %6072 = vmatpush3.bf16.msra.mxu0 %v6069_v10  ;;  %v8641_v45 = vand.u32 4294901760, %v7214_v38 }
 0x19c   : > { %5928 = vmatpush3.bf16.msra.mxu1 %v7270_v34  ;;  %6074 = vmatprep.subr.bf16.mxu0 %v6073_v63  ;;  %v6081_v26 = vpack.c.bf16 %v2061_v51, %v2054_v50  ;;  %v8626_v34 = vand.u32 4294901760, %v7327_v48  ;;  %v8628_v48 = vand.u32 4294901760, %v7175_v17  ;;  %v8634_v17 = vand.u32 4294901760, %v7299_v35 }
 0x19d   : > { %5930 = vmatprep.subr.bf16.mxu1 %v7274_v36  ;;  %v5989_v50 = vpack.c.bf16 %v8643_v12, %v8642_v8 }
 0x19f   : > { %6076 = vmatpush3.bf16.msra.mxu0 %v6073_v63  ;;  %v8631_v63 = vand.u32 4294901760, %v7314_v58 }
 0x1a0   : > { %5932 = vmatpush3.bf16.msra.mxu1 %v7274_v36  ;;  %6078 = vmatprep.subr.bf16.mxu0 %v6077_v32  ;;  %v8627_v36 = vand.u32 4294901760, %v7170_v16  ;;  %v8633_v16 = vand.u32 4294901760, %v7294_v30  ;;  %v8639_v30 = vand.u32 4294901760, %v7202_v31  ;;  %v8645_v31 = vand.u32 4294901760, %v7239_v6 }
 0x1a1   : > { %5934 = vmatprep.subr.bf16.mxu1 %v7060_v39 }
 0x1a2   : > { %v5965_v10 = vpack.c.bf16 %v8628_v48, %v8627_v36  ;;  %v5973_v27 = vpack.c.bf16 %v8634_v17, %v8633_v16  ;;  %v8648_v16 = vld [vmem:[#allocation9_spill] sm:$0xff] }
 0x1a3   : > { %5010 = vmatmul.mubr.f32.vlgmr.msra.gmra.mrb[0].mxu1 %v7314_v58  ;;  %6080 = vmatpush3.bf16.msra.mxu0 %v6077_v32  ;;  %v5977_v58 = vpack.c.bf16 %v8637_v43, %v8636_v42 }
 0x1a4   : > { %5012 = vmatprep.mubr.f32.mxu1 %v7350_v52  ;;  %5936 = vmatpush3.bf16.msra.mxu1 %v7060_v39  ;;  %v8638_v52 = vand.u32 4294901760, %v7200_v29  ;;  %v8644_v29 = vand.u32 4294901760, %v7237_v5 }
 0x1a5   : > { %5938 = vmatprep.subr.bf16.mxu1 %v7095_v57  ;;  %6082 = vmatprep.subr.bf16.mxu0 %v6081_v26 }
 0x1a6   : > { %v5981_v35 = vpack.c.bf16 %v8639_v30, %v8638_v52  ;;  %v5993_v51 = vpack.c.bf16 %v8645_v31, %v8644_v29 }
 0x1a7   : > { %5013 = vmatmul.mubr.f32.gmra.mrb[2].mxu1 %v7342_v61  ;;  %6084 = vmatpush3.bf16.msra.mxu0 %v6081_v26  ;;  %v8640_v61 = vand.u32 4294901760, %v7212_v37  ;;  %v1850_v37 = vld [vmem:[#allocation2 + $0x78] sm:$0xff] }
 0x1a8   : > { %5940 = vmatpush3.bf16.msra.mxu1 %v7095_v57  ;;  %5047 = vmatprep.mubr.f32.mxu1 %v8626_v34 }
 0x1a9   : > { %5942 = vmatprep.subr.bf16.mxu1 %v7101_v59  ;;  %v5985_v32 = vpack.c.bf16 %v8641_v45, %v8640_v61 }
 0x1ac   : > { %5944 = vmatpush3.bf16.msra.mxu1 %v7101_v59 }
 0x1ad   : > { %5946 = vmatprep.subr.bf16.mxu1 %v7112_v62 }
 0x1b0   : > { %5948 = vmatpush3.bf16.msra.mxu1 %v7112_v62 }
 0x1b1   : > { %5950 = vmatprep.subr.bf16.mxu1 %v7145_v4 }
 0x1b4   : > { %5952 = vmatpush3.bf16.msra.mxu1 %v7145_v4 }
 0x1b5   : > { %5954 = vmatprep.subr.bf16.mxu1 %v7155_v9 }
 0x1b8   : > { %5956 = vmatpush3.bf16.msra.mxu1 %v7155_v9 }
 0x1b9   : > { %5958 = vmatprep.subr.bf16.mxu1 %v7165_v15 }
 0x1bc   : > { %5960 = vmatpush3.bf16.msra.mxu1 %v7165_v15 }
 0x1bd   : > { %5962 = vmatprep.subr.bf16.mxu1 %v7187_v18 }
 0x1c0   : > { %5964 = vmatpush3.bf16.msra.mxu1 %v7187_v18 }
 0x1c1   : > { %5966 = vmatprep.subr.bf16.mxu1 %v5965_v10 }
 0x1c3   : > { %5048 = vmatmul.mubr.f32.vlgmr.msra.gmra.mrb[0].mxu1 %v8631_v63 }
 0x1c4   : > { %5050 = vmatprep.mubr.f32.mxu1 %v8632_v25  ;;  %5968 = vmatpush3.bf16.msra.mxu1 %v5965_v10  ;;  %v8647_v25 = vld [vmem:[#allocation8_spill] sm:$0xff] }
 0x1c5   : > { %5970 = vmatprep.subr.bf16.mxu1 %v5969_v2  ;;  %v6093_v17 = vpack.c.bf16 %v8648_v16, %v8647_v25 }
 0x1c7   : > { %5051 = vmatmul.mubr.f32.gmra.mrb[2].mxu1 %v8635_v55 }
 0x1c8   : > { %5972 = vmatpush3.bf16.msra.mxu1 %v5969_v2  ;;  %5085 = vmatprep.mubr.f32.mxu1 %v7309_v54 }
 0x1c9   : > { %5974 = vmatprep.subr.bf16.mxu1 %v5973_v27 }
 0x1cc   : > { %5976 = vmatpush3.bf16.msra.mxu1 %v5973_v27 }
 0x1cd   : > { %5978 = vmatprep.subr.bf16.mxu1 %v5977_v58 }
 0x1d0   : > { %5980 = vmatpush3.bf16.msra.mxu1 %v5977_v58  ;;  %v4319_v58 = vld [vmem:[%s8539_s4] ss:$0 sm:$0xff] }
 0x1d1   : > { %5982 = vmatprep.subr.bf16.mxu1 %v5981_v35 }
 0x1d4   : > { %5984 = vmatpush3.bf16.msra.mxu1 %v5981_v35 }
 0x1d5   : > { %5986 = vmatprep.subr.bf16.mxu1 %v5985_v32 }
 0x1d8   : > { %5988 = vmatpush3.bf16.msra.mxu1 %v5985_v32 }
 0x1d9   : > { %5990 = vmatprep.subr.bf16.mxu1 %v5989_v50 }
 0x1dc   : > { %5992 = vmatpush3.bf16.msra.mxu1 %v5989_v50 }
 0x1dd   : > { %5994 = vmatprep.subr.bf16.mxu1 %v5993_v51 }
 0x1e0   : > { %5996 = vmatpush3.bf16.msra.mxu1 %v5993_v51 }
 0x1e1   : > { %5998 = vmatprep.subr.bf16.mxu1 %v7060_v39 }
 0x1e3   : > { %5086 = vmatmul.mubr.f32.vlgmr.msra.gmra.mrb[0].mxu1 %v7301_v14 }
 0x1e4   : > { %5088 = vmatprep.mubr.f32.mxu1 %v7332_v1  ;;  %6000 = vmatpush3.bf16.msra.mxu1 %v7060_v39  ;;  %v8646_v39 = vld [vmem:[#allocation14_spill] sm:$0xff] }
 0x1e5   : > { %6002 = vmatprep.subr.bf16.mxu1 %v7095_v57 }
 0x1e7   : > { %5089 = vmatmul.mubr.f32.gmra.mrb[2].mxu1 %v7329_v11 }
 0x1e8   : > { %6004 = vmatpush3.bf16.msra.mxu1 %v7095_v57  ;;  %5123 = vmatprep.mubr.f32.mxu1 %v7309_v54  ;;  %v1847_v57 = vld [vmem:[#allocation2 + $0x60] sm:$0xff] }
 0x1e9   : > { %6006 = vmatprep.subr.bf16.mxu1 %v7101_v59 }
 0x1ec   : > { %6008 = vmatpush3.bf16.msra.mxu1 %v7101_v59  ;;  %v1848_v59 = vld [vmem:[#allocation2 + $0x68] sm:$0xff] }
 0x1ed   : > { %6010 = vmatprep.subr.bf16.mxu1 %v7112_v62 }
 0x1f0   : > { %6012 = vmatpush3.bf16.msra.mxu1 %v7112_v62  ;;  %v1895_v62 = vand.u32 4294901760, %v1847_v57 }
 0x1f1   : > { %6014 = vmatprep.subr.bf16.mxu1 %v7145_v4 }
 0x1f4   : > { %6016 = vmatpush3.bf16.msra.mxu1 %v7145_v4  ;;  %v1898_v4 = vand.u32 4294901760, %v1848_v59 }
 0x1f5   : > { %6018 = vmatprep.subr.bf16.mxu1 %v7155_v9 }
 0x1f6   : > { %v7604_v27 = vpack.c.bf16 %v1898_v4, %v1895_v62 }
 0x1f8   : > { %6020 = vmatpush3.bf16.msra.mxu1 %v7155_v9  ;;  %v7578_v9 = vsub.f32 %v1847_v57, %v1895_v62  ;;  %v8649_v62 = vld [vmem:[#allocation10_spill] sm:$0xff] }
 0x1f9   : > { %6022 = vmatprep.subr.bf16.mxu1 %v7165_v15 }
 0x1fa   : > { %v2066_v38 = vand.u32 4294901760, %v7578_v9 }
 0x1fc   : > { %6024 = vmatpush3.bf16.msra.mxu1 %v7165_v15  ;;  %v7580_v15 = vsub.f32 %v1848_v59, %v1898_v4  ;;  %v2067_v5 = vsub.f32 %v7578_v9, %v2066_v38  ;;  %v8650_v4 = vld [vmem:[#allocation11_spill] sm:$0xff] }
 0x1fd   : > { %6026 = vmatprep.subr.bf16.mxu1 %v7187_v18 }
 0x1fe   : > { %v2073_v53 = vand.u32 4294901760, %v7580_v15  ;;  %v2068_v54 = vand.u32 4294901760, %v2067_v5  ;;  %v6117_v42 = vpack.c.bf16 %v7580_v15, %v7578_v9 }
 0x200   : > { %6028 = vmatpush3.bf16.msra.mxu1 %v7187_v18  ;;  %v1849_v18 = vld [vmem:[#allocation2 + $0x70] sm:$0xff]  ;;  %v2074_v6 = vsub.f32 %v7580_v15, %v2073_v53 }
 0x201   : > { %6030 = vmatprep.subr.bf16.mxu1 %v7391_v19  ;;  %v1901_v56 = vand.u32 4294901760, %v1849_v18 }
 0x202   : > { %v2075_v26 = vand.u32 4294901760, %v2074_v6 }
 0x203   : > { %5124 = vmatmul.mubr.f32.vlgmr.msra.gmra.mrb[0].mxu1 %v7301_v14 }
 0x204   : > { %5126 = vmatprep.mubr.f32.mxu1 %v7332_v1  ;;  %6032 = vmatpush3.bf16.msra.mxu1 %v7391_v19  ;;  %v1904_v1 = vand.u32 4294901760, %v1850_v37  ;;  %v6085_v48 = vpack.c.bf16 %v2075_v26, %v2068_v54 }
 0x205   : > { %6034 = vmatprep.subr.bf16.mxu1 %v7399_v40 }
 0x206   : > { %v7592_v14 = vsub.f32 %v1850_v37, %v1904_v1  ;;  %6086 = vmatprep.subr.bf16.mxu0 %v6085_v48  ;;  %v7608_v55 = vpack.c.bf16 %v1904_v1, %v1901_v56 }
 0x207   : > { %5127 = vmatmul.mubr.f32.gmra.mrb[2].mxu1 %v7329_v11  ;;  %v7590_v11 = vsub.f32 %v1849_v18, %v1901_v56  ;;  %6088 = vmatpush3.bf16.msra.mxu0 %v6085_v48  ;;  %v6097_v18 = vpack.c.bf16 %v8650_v4, %v8649_v62 }
 0x208   : > { %6036 = vmatpush3.bf16.msra.mxu1 %v7399_v40  ;;  %v2087_v36 = vand.u32 4294901760, %v7592_v14 }
 0x209   : > { %6038 = vmatprep.subr.bf16.mxu1 %v7403_v33  ;;  %v2080_v34 = vand.u32 4294901760, %v7590_v11  ;;  %v6121_v43 = vpack.c.bf16 %v7592_v14, %v7590_v11 }
 0x20a   : > { %v2088_v47 = vsub.f32 %v7592_v14, %v2087_v36 }
 0x20b   : > { %v2081_v10 = vsub.f32 %v7590_v11, %v2080_v34  ;;  %v7744_v11 = vld [vmem:[#allocation4 + $0x38] sm:$0xff] }
 0x20c   : > { %6040 = vmatpush3.bf16.msra.mxu1 %v7403_v33  ;;  %v2089_v2 = vand.u32 4294901760, %v2088_v47  ;;  %v8652_v47 = vld [vmem:[#allocation13_spill] sm:$0xff] }
 0x20d   : > { %6042 = vmatprep.subr.bf16.mxu1 %v8646_v39  ;;  %v2082_v60 = vand.u32 4294901760, %v2081_v10  ;;  %v8651_v10 = vld [vmem:[#allocation12_spill] sm:$0xff] }
 0x20f   : > { %v6089_v63 = vpack.c.bf16 %v2089_v2, %v2082_v60  ;;  %v6101_v60 = vpack.c.bf16 %v8652_v47, %v8651_v10 }
 0x210   : > { %6044 = vmatpush3.bf16.msra.mxu1 %v8646_v39 }
 0x211   : > { %6046 = vmatprep.subr.bf16.mxu1 %v7446_v0  ;;  %6090 = vmatprep.subr.bf16.mxu0 %v6089_v63 }
 0x212   : > { %6092 = vmatpush3.bf16.msra.mxu0 %v6089_v63 }
 0x213   : > { %6094 = vmatprep.subr.bf16.mxu0 %v6093_v17 }
 0x214   : > { %6048 = vmatpush3.bf16.msra.mxu1 %v7446_v0 }
 0x215   : > { %6050 = vmatprep.subr.bf16.mxu1 %v7459_v23 }
 0x218   : > { %6052 = vmatpush3.bf16.msra.mxu1 %v7459_v23 }
 0x219   : > { %6054 = vmatprep.subr.bf16.mxu1 %v7604_v27 }
 0x21c   : > { %6056 = vmatpush3.bf16.msra.mxu1 %v7604_v27 }
 0x21d   : > { %6058 = vmatprep.subr.bf16.mxu1 %v7608_v55 }
 0x220   : > { %6060 = vmatpush3.bf16.msra.mxu1 %v7608_v55 }
 0x2d6   : > { %v5125_v52 = vpop.f32.mrb[0].mxu1 }
 0x2d7   : > { %v6609_v30 = vadd.f32 %v5125_v52, %v4319_v58  ;;  %v1809_v35 = vpop.f32.mrb[1].mxu1 }
 0x2d8   : > { %v6610_v61 = vadd.f32 %v4319_v58, %v1809_v35  ;;  %v6105_v35 = vpack.c.bf16 %v7439_v7, %v7432_v3  ;;  %v6181_v3 = vpack.c.bf16 %v2073_v53, %v2066_v38  ;;  %v6185_v7 = vpack.c.bf16 %v2087_v36, %v2080_v34  ;;  %v7742_v53 = vld [vmem:[#allocation4 + $0x30] sm:$0xff] }
 0x2d9   : > { %v1832_v45 = vmax.f32 %v6609_v30, 0.0  ;;  %v2674_v14 = vand.u32 4294901760, %v7742_v53  ;;  %v2677_v34 = vand.u32 4294901760, %v7744_v11 }
 0x2da   : > { %v1831_v32 = vmax.f32 %v6610_v61, 0.0  ;;  %v5128_v8 = vpop.f32.mrb[2].mxu1 }
 0x2db   : > { %v7619_v12 = vand.u32 4294901760, %v1832_v45  ;;  %v6611_v50 = vadd.f32 %v5128_v8, %v4319_v58  ;;  %v1821_v29 = vpop.f32.mrb[3].mxu1  ;;  %v7766_v36 = vpack.c.bf16 %v2677_v34, %v2674_v14 }
 0x2dc   : > { %v7621_v31 = vand.u32 4294901760, %v1831_v32  ;;  %v6612_v51 = vadd.f32 %v4319_v58, %v1821_v29  ;;  %v6113_v29 = vpack.c.bf16 %v7461_v13, %v7456_v46 }
 0x2dd   : > { %v7624_v57 = vsub.f32 %v1832_v45, %v7619_v12  ;;  %v1834_v59 = vmax.f32 %v6611_v50, 0.0  ;;  %v6109_v50 = vpack.c.bf16 %v7454_v49, %v7448_v28  ;;  %v7716_v28 = vld [vmem:[#allocation4 + $0x10] sm:$0xff] }
 0x2de   : > { %v1940_v37 = vsub.f32 %v1831_v32, %v7621_v31  ;;  %v1833_v56 = vmax.f32 %v6612_v51, 0.0  ;;  %5199 = vmatprep.mubr.f32.mxu0 %v7621_v31  ;;  %v2662_v13 = vand.u32 4294901760, %v7716_v28 }
 0x2df   : > { %v1951_v1 = vand.u32 4294901760, %v7624_v57  ;;  %v7631_v5 = vand.u32 4294901760, %v1834_v59  ;;  %5200 = vmatmul.mubr.f32.vlgmr.msra.gmra.mrb[4].mxu0 %v7619_v12 }
 0x2e0   : > { %v7634_v6 = vand.u32 4294901760, %v1833_v56  ;;  %6096 = vmatpush3.bf16.msra.mxu0 %v6093_v17  ;;  %v1941_v54 = vand.u32 4294901760, %v1940_v37 }
 0x2e1   : > { %v1952_v26 = vsub.f32 %v7624_v57, %v1951_v1  ;;  %v7640_v48 = vsub.f32 %v1834_v59, %v7631_v5  ;;  %6098 = vmatprep.subr.bf16.mxu0 %v6097_v18  ;;  %v8655_v59 = vand.u32 4294901760, %v8649_v62  ;;  %v6169_v62 = vpack.c.bf16 %v2031_v21, %v2024_v20  ;;  %v7712_v20 = vld [vmem:[#allocation4] sm:$0xff]  ;;  %v7714_v21 = vld [vmem:[#allocation4 + $0x8] sm:$0xff] }
 0x2e2   : > { %v1960_v2 = vsub.f32 %v1833_v56, %v7634_v6  ;;  %5202 = vmatprep.mubr.f32.mxu0 %v7634_v6  ;;  %v1942_v63 = vsub.f32 %v1940_v37, %v1941_v54  ;;  %v8657_v56 = vand.u32 4294901760, %v8651_v10  ;;  %v2656_v49 = vand.u32 4294901760, %v7712_v20 }
 0x2e3   : > { %5203 = vmatmul.mubr.f32.gmra.mrb[6].mxu0 %v7631_v5  ;;  %v1971_v17 = vand.u32 4294901760, %v7640_v48  ;;  %v1953_v30 = vand.u32 4294901760, %v1952_v26  ;;  %v2659_v46 = vand.u32 4294901760, %v7714_v21 }
 0x2e4   : > { %6100 = vmatpush3.bf16.msra.mxu0 %v6097_v18  ;;  %5237 = vmatprep.mubr.f32.mxu0 %v1940_v37  ;;  %v1943_v58 = vand.u32 4294901760, %v1942_v63  ;;  %v1961_v52 = vand.u32 4294901760, %v1960_v2  ;;  %v8656_v18 = vand.u32 4294901760, %v8650_v4  ;;  %v6177_v4 = vpack.c.bf16 %v2059_v44, %v2052_v24  ;;  %v7726_v24 = vld [vmem:[#allocation4 + $0x28] sm:$0xff]  ;;  %v2647_v63 = vld [vmem:[#allocation4 + $0x78] sm:$0xff] }
 0x2e5   : > { %6102 = vmatprep.subr.bf16.mxu0 %v6101_v60  ;;  %v1972_v61 = vsub.f32 %v7640_v48, %v1971_v17  ;;  %v7730_v44 = vpack.c.bf16 %v2659_v46, %v2656_v49  ;;  %v2671_v15 = vand.u32 4294901760, %v7726_v24 }
 0x2e6   : > { %5161 = vmatprep.mubr.f32.mxu1 %v1943_v58  ;;  %v1962_v45 = vsub.f32 %v1960_v2, %v1961_v52  ;;  %v6161_v37 = vpack.c.bf16 %v8656_v18, %v8655_v59 }
 0x2e7   : > { %5162 = vmatmul.mubr.f32.vlgmr.msra.gmra.mrb[4].mxu1 %v1953_v30  ;;  %v1973_v8 = vand.u32 4294901760, %v1972_v61  ;;  %6222 = vmatprep.subr.bf16.mxu1 %v7730_v44 }
 0x2e8   : > { %6104 = vmatpush3.bf16.msra.mxu0 %v6101_v60  ;;  %v1963_v32 = vand.u32 4294901760, %v1962_v45  ;;  %6224 = vmatpush3.bf16.msra.mxu1 %v7730_v44  ;;  %v7797_v60 = vsub.f32 %v7714_v21, %v2659_v46 }
 0x2e9   : > { %6106 = vmatprep.subr.bf16.mxu0 %v6105_v35 }
 0x2ea   : > { %5164 = vmatprep.mubr.f32.mxu1 %v1963_v32 }
 0x2eb   : > { %5165 = vmatmul.mubr.f32.gmra.mrb[6].mxu1 %v1973_v8 }
 0x2ec   : > { %6108 = vmatpush3.bf16.msra.mxu0 %v6105_v35  ;;  %v2786_v35 = vand.u32 4294901760, %v7797_v60 }
 0x2ed   : > { %6110 = vmatprep.subr.bf16.mxu0 %v6109_v50 }
 0x2ee   : > { %v2787_v8 = vsub.f32 %v7797_v60, %v2786_v35 }
 0x2f0   : > { %6112 = vmatpush3.bf16.msra.mxu0 %v6109_v50 }
 0x2f1   : > { %6114 = vmatprep.subr.bf16.mxu0 %v6113_v29 }
 0x2f4   : > { %6116 = vmatpush3.bf16.msra.mxu0 %v6113_v29 }
 0x2f5   : > { %6118 = vmatprep.subr.bf16.mxu0 %v6117_v42 }
 0x2f8   : > { %6120 = vmatpush3.bf16.msra.mxu0 %v6117_v42  ;;  %v8653_v42 = vand.u32 4294901760, %v8647_v25  ;;  %v8658_v25 = vand.u32 4294901760, %v8652_v47  ;;  %v7794_v47 = vsub.f32 %v7712_v20, %v2656_v49 }
 0x2f9   : > { %6122 = vmatprep.subr.bf16.mxu0 %v6121_v43 }
 0x2fa   : > { %v2779_v30 = vand.u32 4294901760, %v7794_v47 }
 0x2fc   : > { %6124 = vmatpush3.bf16.msra.mxu0 %v6121_v43  ;;  %v8654_v43 = vand.u32 4294901760, %v8648_v16  ;;  %v6165_v16 = vpack.c.bf16 %v8658_v25, %v8657_v56  ;;  %v2780_v32 = vsub.f32 %v7794_v47, %v2779_v30 }
 0x2fd   : > { %6126 = vmatprep.subr.bf16.mxu0 %v7391_v19 }
 0x2fe   : > { %v6157_v51 = vpack.c.bf16 %v8654_v43, %v8653_v42  ;;  %v2781_v29 = vand.u32 4294901760, %v2780_v32  ;;  %v2788_v42 = vand.u32 4294901760, %v2787_v8 }
 0x2ff   : > { %5238 = vmatmul.mubr.f32.vlgmr.msra.gmra.mrb[4].mxu0 %v7624_v57  ;;  %v6173_v57 = vpack.c.bf16 %v2045_v41, %v2038_v22  ;;  %v7721_v22 = vld [vmem:[#allocation4 + $0x18] sm:$0xff]  ;;  %v7724_v41 = vld [vmem:[#allocation4 + $0x20] sm:$0xff] }
 0x300   : > { %5240 = vmatprep.mubr.f32.mxu0 %v1960_v2  ;;  %6128 = vmatpush3.bf16.msra.mxu0 %v7391_v19  ;;  %v2668_v9 = vand.u32 4294901760, %v7724_v41  ;;  %v2646_v2 = vld [vmem:[#allocation4 + $0x70] sm:$0xff] }
 0x301   : > { %6130 = vmatprep.subr.bf16.mxu0 %v7399_v40  ;;  %v2698_v58 = vand.u32 4294901760, %v2646_v2 }
 0x303   : > { %5241 = vmatmul.mubr.f32.gmra.mrb[6].mxu0 %v7640_v48  ;;  %v7855_v32 = vsub.f32 %v2646_v2, %v2698_v58 }
 0x304   : > { %6132 = vmatpush3.bf16.msra.mxu0 %v7399_v40  ;;  %5275 = vmatprep.mubr.f32.mxu0 %v1941_v54  ;;  %v2643_v54 = vld [vmem:[#allocation4 + $0x58] sm:$0xff] }
 0x305   : > { %6134 = vmatprep.subr.bf16.mxu0 %v7403_v33  ;;  %v2689_v26 = vand.u32 4294901760, %v2643_v54 }
 0x308   : > { %6136 = vmatpush3.bf16.msra.mxu0 %v7403_v33 }
 0x309   : > { %6138 = vmatprep.subr.bf16.mxu0 %v8646_v39 }
 0x30c   : > { %6140 = vmatpush3.bf16.msra.mxu0 %v8646_v39 }
 0x30d   : > { %6142 = vmatprep.subr.bf16.mxu0 %v7446_v0 }
 0x310   : > { %6144 = vmatpush3.bf16.msra.mxu0 %v7446_v0 }
 0x311   : > { %6146 = vmatprep.subr.bf16.mxu0 %v7459_v23 }
 0x314   : > { %6148 = vmatpush3.bf16.msra.mxu0 %v7459_v23 }
 0x315   : > { %6150 = vmatprep.subr.bf16.mxu0 %v7604_v27 }
 0x318   : > { %6152 = vmatpush3.bf16.msra.mxu0 %v7604_v27 }
 0x319   : > { %6154 = vmatprep.subr.bf16.mxu0 %v7608_v55 }
 0x31c   : > { %6156 = vmatpush3.bf16.msra.mxu0 %v7608_v55 }
 0x31d   : > { %6158 = vmatprep.subr.bf16.mxu0 %v6157_v51 }
 0x31f   : > { %5276 = vmatmul.mubr.f32.vlgmr.msra.gmra.mrb[4].mxu0 %v1951_v1 }
 0x320   : > { %5278 = vmatprep.mubr.f32.mxu0 %v1961_v52  ;;  %6160 = vmatpush3.bf16.msra.mxu0 %v6157_v51  ;;  %v2701_v52 = vand.u32 4294901760, %v2647_v63  ;;  %v7815_v51 = vpack.c.bf16 %v2788_v42, %v2781_v29 }
 0x321   : > { %6162 = vmatprep.subr.bf16.mxu0 %v6161_v37 }
 0x322   : > { %v7805_v45 = vpack.c.bf16 %v2701_v52, %v2698_v58  ;;  %v7857_v8 = vsub.f32 %v2647_v63, %v2701_v52 }
 0x323   : > { %5279 = vmatmul.mubr.f32.gmra.mrb[6].mxu0 %v1971_v17 }
 0x324   : > { %6164 = vmatpush3.bf16.msra.mxu0 %v6161_v37  ;;  %5313 = vmatprep.mubr.f32.mxu0 %v7621_v31 }
 0x325   : > { %6166 = vmatprep.subr.bf16.mxu0 %v6165_v16 }
 0x328   : > { %6168 = vmatpush3.bf16.msra.mxu0 %v6165_v16 }
 0x329   : > { %6170 = vmatprep.subr.bf16.mxu0 %v6169_v62 }
 0x32c   : > { %6172 = vmatpush3.bf16.msra.mxu0 %v6169_v62 }
 0x32d   : > { %6174 = vmatprep.subr.bf16.mxu0 %v6173_v57 }
 0x330   : > { %6176 = vmatpush3.bf16.msra.mxu0 %v6173_v57  ;;  %v7832_v57 = vsub.f32 %v2643_v54, %v2689_v26 }
 0x331   : > { %6178 = vmatprep.subr.bf16.mxu0 %v6177_v4 }
 0x332   : > { %v8593_v20 = vand.u32 4294901760, %v7832_v57 }
 0x334   : > { %6180 = vmatpush3.bf16.msra.mxu0 %v6177_v4  ;;  %v2857_v46 = vsub.f32 %v7832_v57, %v8593_v20 }
 0x335   : > { %6182 = vmatprep.subr.bf16.mxu0 %v6181_v3 }
 0x338   : > { %6184 = vmatpush3.bf16.msra.mxu0 %v6181_v3 }
 0x339   : > { %6186 = vmatprep.subr.bf16.mxu0 %v6185_v7 }
 0x33c   : > { %6188 = vmatpush3.bf16.msra.mxu0 %v6185_v7 }
 0x33d   : > { %6190 = vmatprep.subr.bf16.mxu0 %v7391_v19 }
 0x33f   : > { %5314 = vmatmul.mubr.f32.vlgmr.msra.gmra.mrb[4].mxu0 %v7619_v12 }
 0x340   : > { %5316 = vmatprep.mubr.f32.mxu0 %v7634_v6  ;;  %6192 = vmatpush3.bf16.msra.mxu0 %v7391_v19  ;;  %v2665_v19 = vand.u32 4294901760, %v7721_v22 }
 0x341   : > { %6194 = vmatprep.subr.bf16.mxu0 %v7399_v40 }
 0x342   : > { %v7740_v38 = vpack.c.bf16 %v2665_v19, %v2662_v13 }
 0x343   : > { %5317 = vmatmul.mubr.f32.gmra.mrb[6].mxu0 %v7631_v5 }
 0x344   : > { %6196 = vmatpush3.bf16.msra.mxu0 %v7399_v40  ;;  %5351 = vmatprep.mubr.f32.mxu0 %v7621_v31  ;;  %v7754_v40 = vpack.c.bf16 %v2671_v15, %v2668_v9 }
 0x345   : > { %6198 = vmatprep.subr.bf16.mxu0 %v7403_v33  ;;  %6226 = vmatprep.subr.bf16.mxu1 %v7740_v38 }
 0x346   : > { %6228 = vmatpush3.bf16.msra.mxu1 %v7740_v38 }
 0x347   : > { %6230 = vmatprep.subr.bf16.mxu1 %v7754_v40 }
 0x348   : > { %6200 = vmatpush3.bf16.msra.mxu0 %v7403_v33  ;;  %v2640_v33 = vld [vmem:[#allocation4 + $0x40] sm:$0xff] }
 0x349   : > { %6202 = vmatprep.subr.bf16.mxu0 %v8646_v39 }
 0x34a   : > { %6232 = vmatpush3.bf16.msra.mxu1 %v7754_v40 }
 0x34b   : > { %6234 = vmatprep.subr.bf16.mxu1 %v7766_v36 }
 0x34c   : > { %6204 = vmatpush3.bf16.msra.mxu0 %v8646_v39  ;;  %v2680_v39 = vand.u32 4294901760, %v2640_v33 }
 0x34d   : > { %6206 = vmatprep.subr.bf16.mxu0 %v7446_v0 }
 0x34e   : > { %6236 = vmatpush3.bf16.msra.mxu1 %v7766_v36  ;;  %v7818_v59 = vsub.f32 %v2640_v33, %v2680_v39 }
 0x350   : > { %6208 = vmatpush3.bf16.msra.mxu0 %v7446_v0  ;;  %v2641_v0 = vld [vmem:[#allocation4 + $0x48] sm:$0xff]  ;;  %v8596_v37 = vand.u32 4294901760, %v7818_v59 }
 0x351   : > { %6210 = vmatprep.subr.bf16.mxu0 %v7459_v23  ;;  %v2683_v31 = vand.u32 4294901760, %v2641_v0 }
 0x352   : > { %v2836_v25 = vsub.f32 %v7818_v59, %v8596_v37 }
 0x353   : > { %v7783_v1 = vpack.c.bf16 %v2683_v31, %v2680_v39  ;;  %v7820_v18 = vsub.f32 %v2641_v0, %v2683_v31  ;;  %v2858_v31 = vand.u32 4294901760, %v2857_v46  ;;  %v7892_v46 = vpack.c.bf16 %v7857_v8, %v7855_v32 }
 0x354   : > { %6212 = vmatpush3.bf16.msra.mxu0 %v7459_v23  ;;  %v2642_v23 = vld [vmem:[#allocation4 + $0x50] sm:$0xff]  ;;  %v2837_v4 = vand.u32 4294901760, %v2836_v25 }
 0x355   : > { %6214 = vmatprep.subr.bf16.mxu0 %v7604_v27  ;;  %6238 = vmatprep.subr.bf16.mxu1 %v7783_v1  ;;  %v8595_v56 = vand.u32 4294901760, %v7820_v18 }
 0x356   : > { %6240 = vmatpush3.bf16.msra.mxu1 %v7783_v1 }
 0x357   : > { %v2843_v16 = vsub.f32 %v7820_v18, %v8595_v56 }
 0x358   : > { %6216 = vmatpush3.bf16.msra.mxu0 %v7604_v27  ;;  %v2686_v27 = vand.u32 4294901760, %v2642_v23 }
 0x359   : > { %6218 = vmatprep.subr.bf16.mxu0 %v7608_v55  ;;  %v2844_v3 = vand.u32 4294901760, %v2843_v16  ;;  %v7876_v16 = vpack.c.bf16 %v7797_v60, %v7794_v47 }
 0x35a   : > { %v7830_v62 = vsub.f32 %v2642_v23, %v2686_v27 }
 0x35b   : > { %v7836_v21 = vpack.c.bf16 %v2844_v3, %v2837_v4  ;;  %v7880_v4 = vpack.c.bf16 %v7820_v18, %v7818_v59 }
 0x35c   : > { %6220 = vmatpush3.bf16.msra.mxu0 %v7608_v55  ;;  %v7787_v55 = vpack.c.bf16 %v2689_v26, %v2686_v27  ;;  %v8594_v7 = vand.u32 4294901760, %v7830_v62  ;;  %v7884_v3 = vpack.c.bf16 %v7832_v57, %v7830_v62 }
 0x35e   : > { %6242 = vmatprep.subr.bf16.mxu1 %v7787_v55  ;;  %v2850_v49 = vsub.f32 %v7830_v62, %v8594_v7 }
 0x35f   : > { %5352 = vmatmul.mubr.f32.vlgmr.msra.gmra.mrb[4].mxu0 %v7619_v12  ;;  %v2644_v12 = vld [vmem:[#allocation4 + $0x60] sm:$0xff]  ;;  %6244 = vmatpush3.bf16.msra.mxu1 %v7787_v55 }
 0x360   : > { %5354 = vmatprep.mubr.f32.mxu0 %v7634_v6  ;;  %v2645_v6 = vld [vmem:[#allocation4 + $0x68] sm:$0xff]  ;;  %v2851_v39 = vand.u32 4294901760, %v2850_v49 }
 0x361   : > { %v2695_v48 = vand.u32 4294901760, %v2645_v6 }
 0x362   : > { %v7850_v27 = vpack.c.bf16 %v2858_v31, %v2851_v39  ;;  %v4320_v39 = vld [vmem:[%s8541_s6] ss:$0 sm:$0xff]  ;;  %v7900_v31 = vsub.f32 %v7716_v28, %v2662_v13  ;;  %v7913_v28 = vsub.f32 %v7724_v41, %v2668_v9 }
 0x363   : > { %5355 = vmatmul.mubr.f32.gmra.mrb[6].mxu0 %v7631_v5  ;;  %v2692_v5 = vand.u32 4294901760, %v2644_v12  ;;  %v7846_v0 = vsub.f32 %v2645_v6, %v2695_v48 }
 0x364   : > { %v8660_v47 = vand.u32 4294901760, %v7913_v28 }
 0x365   : > { %v7791_v10 = vpack.c.bf16 %v2695_v48, %v2692_v5  ;;  %v7844_v33 = vsub.f32 %v2644_v12, %v2692_v5  ;;  %v8591_v54 = vand.u32 4294901760, %v7846_v0  ;;  %v8590_v5 = vand.u32 4294901760, %v7855_v32 }
 0x366   : > { %v8589_v48 = vand.u32 4294901760, %v7857_v8 }
 0x367   : > { %6246 = vmatprep.subr.bf16.mxu1 %v7791_v10  ;;  %v8592_v23 = vand.u32 4294901760, %v7844_v33  ;;  %v2871_v12 = vsub.f32 %v7846_v0, %v8591_v54  ;;  %v2878_v42 = vsub.f32 %v7855_v32, %v8590_v5  ;;  %v7888_v49 = vpack.c.bf16 %v7846_v0, %v7844_v33 }
 0x368   : > { %6248 = vmatpush3.bf16.msra.mxu1 %v7791_v10  ;;  %v2885_v2 = vsub.f32 %v7857_v8, %v8589_v48 }
 0x369   : > { %6250 = vmatprep.subr.bf16.mxu1 %v7805_v45  ;;  %v2864_v26 = vsub.f32 %v7844_v33, %v8592_v23  ;;  %v2872_v29 = vand.u32 4294901760, %v2871_v12  ;;  %v2879_v58 = vand.u32 4294901760, %v2878_v42 }
 0x36a   : > { %v2886_v52 = vand.u32 4294901760, %v2885_v2 }
 0x36b   : > { %v2865_v6 = vand.u32 4294901760, %v2864_v26  ;;  %v7905_v26 = vsub.f32 %v7721_v22, %v2665_v19  ;;  %v7918_v22 = vsub.f32 %v7726_v24, %v2671_v15  ;;  %v8598_v15 = vand.u32 4294901760, %v7913_v28 }
 0x36c   : > { %6252 = vmatpush3.bf16.msra.mxu1 %v7805_v45  ;;  %v7872_v25 = vpack.c.bf16 %v2886_v52, %v2879_v58  ;;  %v2793_v58 = vand.u32 4294901760, %v7900_v31 }
 0x36d   : > { %6254 = vmatprep.subr.bf16.mxu1 %v7815_v51  ;;  %v7870_v63 = vpack.c.bf16 %v2872_v29, %v2865_v6  ;;  %v2800_v52 = vand.u32 4294901760, %v7905_v26  ;;  %v8661_v60 = vand.u32 4294901760, %v7918_v22 }
 0x36f   : > { %v2801_v41 = vsub.f32 %v7905_v26, %v2800_v52 }
 0x3ba   : > { %v7799_v17 = vpop.f32.mrb[4].mxu1 }
 0x3bb   : > { %v1945_v61 = vpop.f32.mrb[5].mxu1  ;;  %v1956_v12 = vadd.f32 %v7799_v17, %v4320_v39 }
 0x3bc   : > { %v1946_v6 = vadd.f32 %v4320_v39, %v1945_v61 }
 0x3be   : > { %v5166_v50 = vpop.f32.mrb[6].mxu1 }
 0x3bf   : > { %v1965_v43 = vpop.f32.mrb[7].mxu1  ;;  %v1976_v13 = vadd.f32 %v5166_v50, %v4320_v39  ;;  %v8597_v50 = vand.u32 4294901760, %v7918_v22 }
 0x3c0   : > { %v1966_v17 = vadd.f32 %v4320_v39, %v1965_v43  ;;  %v7938_v39 = vsub.f32 %v7742_v53, %v2674_v14  ;;  %v2808_v14 = vsub.f32 %v7913_v28, %v8598_v15 }
 0x432   : > { %v5353_v29 = vpop.f32.mrb[4].mxu0 }
 0x433   : > { %v6614_v42 = vadd.f32 %v5353_v29, %v1956_v12  ;;  %v2606_v2 = vpop.f32.mrb[5].mxu0 }
 0x434   : > { %v6616_v48 = vadd.f32 %v2606_v2, %v1946_v6  ;;  %v2794_v6 = vsub.f32 %v7900_v31, %v2793_v58 }
 0x435   : > { %v2629_v19 = vmax.f32 %v6614_v42, 0.0  ;;  %v7943_v42 = vsub.f32 %v7744_v11, %v2677_v34  ;;  %v2815_v11 = vsub.f32 %v7918_v22, %v8597_v50  ;;  %v2809_v50 = vand.u32 4294901760, %v2808_v14 }
 0x436   : > { %v2628_v61 = vmax.f32 %v6616_v48, 0.0  ;;  %v5356_v12 = vpop.f32.mrb[6].mxu0 }
 0x437   : > { %v7920_v29 = vand.u32 4294901760, %v2629_v19  ;;  %v6618_v5 = vadd.f32 %v5356_v12, %v1976_v13  ;;  %v2618_v54 = vpop.f32.mrb[7].mxu0 }
 0x438   : > { %v7928_v9 = vand.u32 4294901760, %v2628_v61  ;;  %v6620_v24 = vadd.f32 %v2618_v54, %v1966_v17 }
 0x439   : > { %v7933_v43 = vsub.f32 %v2629_v19, %v7920_v29  ;;  %v2631_v48 = vmax.f32 %v6618_v5, 0.0  ;;  %v2795_v19 = vand.u32 4294901760, %v2794_v6  ;;  %v2802_v5 = vand.u32 4294901760, %v2801_v41 }
 0x43a   : > { %v7946_v54 = vsub.f32 %v2628_v61, %v7928_v9  ;;  %v2630_v2 = vmax.f32 %v6620_v24, 0.0  ;;  %v2821_v6 = vand.u32 4294901760, %v7938_v39  ;;  %v2828_v41 = vand.u32 4294901760, %v7943_v42 }
 0x43b   : > { %v8599_v13 = vand.u32 4294901760, %v7933_v43  ;;  %v7949_v17 = vand.u32 4294901760, %v2631_v48  ;;  %v6257_v20 = vpack.c.bf16 %v2802_v5, %v2795_v19 }
 0x43c   : > { %v7951_v12 = vand.u32 4294901760, %v2630_v2  ;;  %v2738_v53 = vand.u32 4294901760, %v7946_v54  ;;  %v2829_v19 = vsub.f32 %v7943_v42, %v2828_v41 }
 0x43d   : > { %v2749_v34 = vsub.f32 %v7933_v43, %v8599_v13  ;;  %v7964_v61 = vsub.f32 %v2631_v48, %v7949_v17  ;;  %v2816_v48 = vand.u32 4294901760, %v2815_v11 }
 0x43e   : > { %v7969_v24 = vsub.f32 %v2630_v2, %v7951_v12  ;;  %v2739_v23 = vsub.f32 %v7946_v54, %v2738_v53  ;;  %v2822_v2 = vsub.f32 %v7938_v39, %v2821_v6 }
 0x43f   : > { %v8600_v7 = vand.u32 4294901760, %v7964_v61  ;;  %v2750_v15 = vand.u32 4294901760, %v2749_v34  ;;  %v6261_v11 = vpack.c.bf16 %v2816_v48, %v2809_v50  ;;  %v8034_v50 = vld [vmem:[%s8544_s9 + $0x20] sm:$0xff]  ;;  %v6297_v48 = vpack.c.bf16 %v7943_v42, %v7938_v39 }
 0x440   : > { %v2740_v56 = vand.u32 4294901760, %v2739_v23  ;;  %v2758_v37 = vand.u32 4294901760, %v7969_v24  ;;  %v2823_v34 = vand.u32 4294901760, %v2822_v2 }
 0x441   : > { %v2769_v13 = vsub.f32 %v7964_v61, %v8600_v7  ;;  %v2830_v7 = vand.u32 4294901760, %v2829_v19 }
 0x442   : > { %5389 = vmatprep.mubr.f32.mxu1 %v2740_v56  ;;  %v2759_v23 = vsub.f32 %v7969_v24, %v2758_v37 }
 0x443   : > { %5390 = vmatmul.mubr.f32.vlgmr.msra.gmra.mrb[8].mxu1 %v2750_v15  ;;  %v2770_v14 = vand.u32 4294901760, %v2769_v13  ;;  %v6265_v56 = vpack.c.bf16 %v2830_v7, %v2823_v34  ;;  %v6293_v7 = vpack.c.bf16 %v7918_v22, %v7913_v28  ;;  %v8039_v13 = vld [vmem:[%s8544_s9 + $0x28] sm:$0xff]  ;;  %v8066_v34 = vld [vmem:[%s8544_s9 + $0x38] sm:$0xff]  ;;  %v8667_v22 = vand.u32 4294901760, %v7844_v33  ;;  %v3441_v33 = vld [vmem:[%s8544_s9 + $0x60] sm:$0xff] }
 0x444   : > { %6256 = vmatpush3.bf16.msra.mxu1 %v7815_v51  ;;  %v2760_v5 = vand.u32 4294901760, %v2759_v23  ;;  %v6289_v51 = vpack.c.bf16 %v7905_v26, %v7900_v31  ;;  %v3465_v23 = vand.u32 4294901760, %v8034_v50  ;;  %v8664_v31 = vand.u32 4294901760, %v7820_v18 }
 0x445   : > { %6258 = vmatprep.subr.bf16.mxu1 %v6257_v20  ;;  %v8670_v18 = vand.u32 4294901760, %v7857_v8 }
 0x446   : > { %5392 = vmatprep.mubr.f32.mxu1 %v2760_v5  ;;  %v3468_v5 = vand.u32 4294901760, %v8039_v13 }
 0x447   : > { %5393 = vmatmul.mubr.f32.gmra.mrb[10].mxu1 %v2770_v14 }
 0x448   : > { %6260 = vmatpush3.bf16.msra.mxu1 %v6257_v20  ;;  %5427 = vmatprep.mubr.f32.mxu1 %v7928_v9  ;;  %v8010_v20 = vld [vmem:[%s8544_s9] sm:$0xff] }
 0x449   : > { %6262 = vmatprep.subr.bf16.mxu1 %v6261_v11 }
 0x44c   : > { %6264 = vmatpush3.bf16.msra.mxu1 %v6261_v11  ;;  %v8061_v11 = vld [vmem:[%s8544_s9 + $0x30] sm:$0xff] }
 0x44d   : > { %6266 = vmatprep.subr.bf16.mxu1 %v6265_v56 }
 0x450   : > { %6268 = vmatpush3.bf16.msra.mxu1 %v6265_v56  ;;  %v8075_v56 = vpack.c.bf16 %v3468_v5, %v3465_v23 }
 0x451   : > { %6270 = vmatprep.subr.bf16.mxu1 %v7836_v21 }
 0x454   : > { %6272 = vmatpush3.bf16.msra.mxu1 %v7836_v21  ;;  %v8015_v21 = vld [vmem:[%s8544_s9 + $0x8] sm:$0xff] }
 0x455   : > { %6274 = vmatprep.subr.bf16.mxu1 %v7850_v27 }
 0x458   : > { %6276 = vmatpush3.bf16.msra.mxu1 %v7850_v27  ;;  %v8020_v27 = vld [vmem:[%s8544_s9 + $0x10] sm:$0xff] }
 0x459   : > { %6278 = vmatprep.subr.bf16.mxu1 %v7870_v63  ;;  %v3459_v15 = vand.u32 4294901760, %v8020_v27 }
 0x45c   : > { %6280 = vmatpush3.bf16.msra.mxu1 %v7870_v63  ;;  %v3453_v63 = vand.u32 4294901760, %v8010_v20 }
 0x45d   : > { %6282 = vmatprep.subr.bf16.mxu1 %v7872_v25 }
 0x460   : > { %6284 = vmatpush3.bf16.msra.mxu1 %v7872_v25  ;;  %v3456_v25 = vand.u32 4294901760, %v8015_v21 }
 0x461   : > { %6286 = vmatprep.subr.bf16.mxu1 %v7876_v16 }
 0x462   : > { %v8048_v19 = vpack.c.bf16 %v3456_v25, %v3453_v63 }
 0x463   : > { %5428 = vmatmul.mubr.f32.vlgmr.msra.gmra.mrb[8].mxu1 %v7920_v29 }
 0x464   : > { %5430 = vmatprep.mubr.f32.mxu1 %v7951_v12  ;;  %6288 = vmatpush3.bf16.msra.mxu1 %v7876_v16  ;;  %v8028_v16 = vld [vmem:[%s8544_s9 + $0x18] sm:$0xff] }
 0x465   : > { %6290 = vmatprep.subr.bf16.mxu1 %v6289_v51  ;;  %v8601_v2 = vand.u32 4294901760, %v8028_v16  ;;  %6414 = vmatprep.subr.bf16.mxu0 %v8048_v19 }
 0x466   : > { %6416 = vmatpush3.bf16.msra.mxu0 %v8048_v19 }
 0x467   : > { %5431 = vmatmul.mubr.f32.gmra.mrb[10].mxu1 %v7949_v17  ;;  %v8056_v14 = vpack.c.bf16 %v8601_v2, %v3459_v15  ;;  %v3474_v2 = vand.u32 4294901760, %v8066_v34 }
 0x468   : > { %6292 = vmatpush3.bf16.msra.mxu1 %v6289_v51  ;;  %5465 = vmatprep.mubr.f32.mxu1 %v7946_v54  ;;  %v3471_v51 = vand.u32 4294901760, %v8061_v11  ;;  %v8217_v54 = vsub.f32 %v8015_v21, %v3456_v25 }
 0x469   : > { %6294 = vmatprep.subr.bf16.mxu1 %v6293_v7  ;;  %6418 = vmatprep.subr.bf16.mxu0 %v8056_v14 }
 0x46a   : > { %6420 = vmatpush3.bf16.msra.mxu0 %v8056_v14 }
 0x46b   : > { %6422 = vmatprep.subr.bf16.mxu0 %v8075_v56 }
 0x46c   : > { %6296 = vmatpush3.bf16.msra.mxu1 %v6293_v7  ;;  %v8086_v7 = vpack.c.bf16 %v3474_v2, %v3471_v51 }
 0x46d   : > { %6298 = vmatprep.subr.bf16.mxu1 %v6297_v48 }
 0x46e   : > { %6424 = vmatpush3.bf16.msra.mxu0 %v8075_v56 }
 0x46f   : > { %6426 = vmatprep.subr.bf16.mxu0 %v8086_v7 }
 0x470   : > { %6300 = vmatpush3.bf16.msra.mxu1 %v6297_v48 }
 0x471   : > { %6302 = vmatprep.subr.bf16.mxu1 %v7880_v4 }
 0x472   : > { %6428 = vmatpush3.bf16.msra.mxu0 %v8086_v7 }
 0x474   : > { %6304 = vmatpush3.bf16.msra.mxu1 %v7880_v4  ;;  %v6349_v4 = vpack.c.bf16 %v2786_v35, %v2779_v30  ;;  %v6357_v30 = vpack.c.bf16 %v8661_v60, %v8660_v47  ;;  %v8662_v35 = vand.u32 4294901760, %v7964_v61 }
 0x475   : > { %6306 = vmatprep.subr.bf16.mxu1 %v7884_v3 }
 0x478   : > { %6308 = vmatpush3.bf16.msra.mxu1 %v7884_v3  ;;  %v6353_v3 = vpack.c.bf16 %v2800_v52, %v2793_v58  ;;  %v8665_v58 = vand.u32 4294901760, %v7830_v62  ;;  %v8666_v52 = vand.u32 4294901760, %v7832_v57 }
 0x479   : > { %6310 = vmatprep.subr.bf16.mxu1 %v7888_v49 }
 0x47a   : > { %v6369_v28 = vpack.c.bf16 %v8666_v52, %v8665_v58 }
 0x47c   : > { %6312 = vmatpush3.bf16.msra.mxu1 %v7888_v49  ;;  %v8659_v49 = vand.u32 4294901760, %v7933_v43 }
 0x47d   : > { %6314 = vmatprep.subr.bf16.mxu1 %v7892_v46 }
 0x480   : > { %6316 = vmatpush3.bf16.msra.mxu1 %v7892_v46  ;;  %v6361_v46 = vpack.c.bf16 %v2828_v41, %v2821_v6  ;;  %v3583_v41 = vand.u32 4294901760, %v8217_v54 }
 0x481   : > { %6318 = vmatprep.subr.bf16.mxu1 %v7730_v44 }
 0x482   : > { %v3584_v21 = vsub.f32 %v8217_v54, %v3583_v41 }
 0x483   : > { %5466 = vmatmul.mubr.f32.vlgmr.msra.gmra.mrb[8].mxu1 %v7933_v43  ;;  %v8668_v43 = vand.u32 4294901760, %v7846_v0  ;;  %v3442_v0 = vld [vmem:[%s8544_s9 + $0x68] sm:$0xff] }
 0x484   : > { %5468 = vmatprep.mubr.f32.mxu1 %v7969_v24  ;;  %6320 = vmatpush3.bf16.msra.mxu1 %v7730_v44  ;;  %v3492_v8 = vand.u32 4294901760, %v3442_v0  ;;  %v3585_v25 = vand.u32 4294901760, %v3584_v21 }
 0x485   : > { %6322 = vmatprep.subr.bf16.mxu1 %v7740_v38  ;;  %v6373_v39 = vpack.c.bf16 %v8668_v43, %v8667_v22 }
 0x487   : > { %5469 = vmatmul.mubr.f32.gmra.mrb[10].mxu1 %v7964_v61 }
 0x488   : > { %6324 = vmatpush3.bf16.msra.mxu1 %v7740_v38  ;;  %5503 = vmatprep.mubr.f32.mxu1 %v2738_v53 }
 0x489   : > { %6326 = vmatprep.subr.bf16.mxu1 %v7754_v40 }
 0x48c   : > { %6328 = vmatpush3.bf16.msra.mxu1 %v7754_v40 }
 0x48d   : > { %6330 = vmatprep.subr.bf16.mxu1 %v7766_v36 }
 0x490   : > { %6332 = vmatpush3.bf16.msra.mxu1 %v7766_v36 }
 0x491   : > { %6334 = vmatprep.subr.bf16.mxu1 %v7783_v1 }
 0x494   : > { %6336 = vmatpush3.bf16.msra.mxu1 %v7783_v1 }
 0x495   : > { %6338 = vmatprep.subr.bf16.mxu1 %v7787_v55 }
 0x498   : > { %6340 = vmatpush3.bf16.msra.mxu1 %v7787_v55 }
 0x499   : > { %6342 = vmatprep.subr.bf16.mxu1 %v7791_v10 }
 0x49c   : > { %6344 = vmatpush3.bf16.msra.mxu1 %v7791_v10 }
 0x49d   : > { %6346 = vmatprep.subr.bf16.mxu1 %v7805_v45 }
 0x4a0   : > { %6348 = vmatpush3.bf16.msra.mxu1 %v7805_v45 }
 0x4a1   : > { %6350 = vmatprep.subr.bf16.mxu1 %v6349_v4 }
 0x4a3   : > { %5504 = vmatmul.mubr.f32.vlgmr.msra.gmra.mrb[8].mxu1 %v8659_v49 }
 0x4a4   : > { %5506 = vmatprep.mubr.f32.mxu1 %v2758_v37  ;;  %6352 = vmatpush3.bf16.msra.mxu1 %v6349_v4  ;;  %v8663_v37 = vand.u32 4294901760, %v7818_v59  ;;  %v8669_v59 = vand.u32 4294901760, %v7855_v32  ;;  %v3489_v32 = vand.u32 4294901760, %v3441_v33 }
 0x4a5   : > { %6354 = vmatprep.subr.bf16.mxu1 %v6353_v3 }
 0x4a6   : > { %v6365_v26 = vpack.c.bf16 %v8664_v31, %v8663_v37  ;;  %v6377_v42 = vpack.c.bf16 %v8670_v18, %v8669_v59  ;;  %v8268_v43 = vsub.f32 %v3441_v33, %v3489_v32 }
 0x4a7   : > { %5507 = vmatmul.mubr.f32.gmra.mrb[10].mxu1 %v8662_v35 }
 0x4a8   : > { %6356 = vmatpush3.bf16.msra.mxu1 %v6353_v3  ;;  %5541 = vmatprep.mubr.f32.mxu1 %v7928_v9 }
 0x4a9   : > { %6358 = vmatprep.subr.bf16.mxu1 %v6357_v30 }
 0x4ac   : > { %6360 = vmatpush3.bf16.msra.mxu1 %v6357_v30 }
 0x4ad   : > { %6362 = vmatprep.subr.bf16.mxu1 %v6361_v46 }
 0x4b0   : > { %6364 = vmatpush3.bf16.msra.mxu1 %v6361_v46 }
 0x4b1   : > { %6366 = vmatprep.subr.bf16.mxu1 %v6365_v26 }
 0x4b4   : > { %6368 = vmatpush3.bf16.msra.mxu1 %v6365_v26 }
 0x4b5   : > { %6370 = vmatprep.subr.bf16.mxu1 %v6369_v28 }
 0x4b8   : > { %6372 = vmatpush3.bf16.msra.mxu1 %v6369_v28 }
 0x4b9   : > { %6374 = vmatprep.subr.bf16.mxu1 %v6373_v39 }
 0x4bc   : > { %6376 = vmatpush3.bf16.msra.mxu1 %v6373_v39  ;;  %v8270_v39 = vsub.f32 %v3442_v0, %v3492_v8 }
 0x4bd   : > { %6378 = vmatprep.subr.bf16.mxu1 %v6377_v42 }
 0x4c0   : > { %6380 = vmatpush3.bf16.msra.mxu1 %v6377_v42  ;;  %v8605_v42 = vand.u32 4294901760, %v8268_v43 }
 0x4c1   : > { %6382 = vmatprep.subr.bf16.mxu1 %v7730_v44 }
 0x4c3   : > { %5542 = vmatmul.mubr.f32.vlgmr.msra.gmra.mrb[8].mxu1 %v7920_v29 }
 0x4c4   : > { %5544 = vmatprep.mubr.f32.mxu1 %v7951_v12  ;;  %6384 = vmatpush3.bf16.msra.mxu1 %v7730_v44  ;;  %v3437_v44 = vld [vmem:[%s8544_s9 + $0x40] sm:$0xff] }
 0x4c5   : > { %6386 = vmatprep.subr.bf16.mxu1 %v7740_v38 }
 0x4c7   : > { %5545 = vmatmul.mubr.f32.gmra.mrb[10].mxu1 %v7949_v17 }
 0x4c8   : > { %6388 = vmatpush3.bf16.msra.mxu1 %v7740_v38  ;;  %5579 = vmatprep.mubr.f32.mxu1 %v7928_v9  ;;  %v3438_v38 = vld [vmem:[%s8544_s9 + $0x48] sm:$0xff]  ;;  %v8212_v9 = vsub.f32 %v8010_v20, %v3453_v63 }
 0x4c9   : > { %6390 = vmatprep.subr.bf16.mxu1 %v7754_v40 }
 0x4ca   : > { %v3576_v6 = vand.u32 4294901760, %v8212_v9 }
 0x4cc   : > { %6392 = vmatpush3.bf16.msra.mxu1 %v7754_v40  ;;  %v3477_v40 = vand.u32 4294901760, %v3437_v44  ;;  %v3577_v20 = vsub.f32 %v8212_v9, %v3576_v6 }
 0x4cd   : > { %6394 = vmatprep.subr.bf16.mxu1 %v7766_v36 }
 0x4ce   : > { %v3578_v63 = vand.u32 4294901760, %v3577_v20  ;;  %v8242_v4 = vsub.f32 %v3437_v44, %v3477_v40  ;;  %v8604_v44 = vand.u32 4294901760, %v8270_v39  ;;  %v8300_v20 = vpack.c.bf16 %v8217_v54, %v8212_v9 }
 0x4d0   : > { %6396 = vmatpush3.bf16.msra.mxu1 %v7766_v36  ;;  %v3480_v36 = vand.u32 4294901760, %v3438_v38  ;;  %v8239_v48 = vpack.c.bf16 %v3585_v25, %v3578_v63  ;;  %v8609_v49 = vand.u32 4294901760, %v8242_v4  ;;  %v8312_v25 = vpack.c.bf16 %v8270_v39, %v8268_v43 }
 0x4d1   : > { %6398 = vmatprep.subr.bf16.mxu1 %v7783_v1 }
 0x4d2   : > { %v8244_v3 = vsub.f32 %v3438_v38, %v3480_v36  ;;  %v3633_v60 = vsub.f32 %v8242_v4, %v8609_v49 }
 0x4d4   : > { %6400 = vmatpush3.bf16.msra.mxu1 %v7783_v1  ;;  %v8187_v1 = vpack.c.bf16 %v3480_v36, %v3477_v40  ;;  %v8608_v47 = vand.u32 4294901760, %v8244_v3  ;;  %v3634_v37 = vand.u32 4294901760, %v3633_v60  ;;  %v3661_v40 = vsub.f32 %v8268_v43, %v8605_v42 }
 0x4d5   : > { %6402 = vmatprep.subr.bf16.mxu1 %v7787_v55  ;;  %v8304_v21 = vpack.c.bf16 %v8244_v3, %v8242_v4 }
 0x4d6   : > { %6430 = vmatprep.subr.bf16.mxu0 %v8187_v1  ;;  %v3640_v30 = vsub.f32 %v8244_v3, %v8608_v47 }
 0x4d7   : > { %6432 = vmatpush3.bf16.msra.mxu0 %v8187_v1 }
 0x4d8   : > { %6404 = vmatpush3.bf16.msra.mxu1 %v7787_v55  ;;  %v3439_v55 = vld [vmem:[%s8544_s9 + $0x50] sm:$0xff]  ;;  %v3641_v31 = vand.u32 4294901760, %v3640_v30  ;;  %v8321_v30 = vsub.f32 %v8020_v27, %v3459_v15  ;;  %v8336_v27 = vsub.f32 %v8034_v50, %v3465_v23 }
 0x4d9   : > { %6406 = vmatprep.subr.bf16.mxu1 %v7791_v10 }
 0x4da   : > { %v8260_v52 = vpack.c.bf16 %v3641_v31, %v3634_v37  ;;  %v8671_v37 = vand.u32 4294901760, %v8028_v16  ;;  %v8673_v9 = vand.u32 4294901760, %v8336_v27 }
 0x4dc   : > { %6408 = vmatpush3.bf16.msra.mxu1 %v7791_v10  ;;  %v3440_v10 = vld [vmem:[%s8544_s9 + $0x58] sm:$0xff]  ;;  %v8326_v31 = vsub.f32 %v8028_v16, %v8671_v37  ;;  %v8341_v16 = vsub.f32 %v8039_v13, %v3468_v5  ;;  %v8611_v13 = vand.u32 4294901760, %v8336_v27 }
 0x4dd   : > { %6410 = vmatprep.subr.bf16.mxu1 %v7805_v45  ;;  %v3486_v62 = vand.u32 4294901760, %v3440_v10 }
 0x4de   : > { %v8610_v5 = vand.u32 4294901760, %v8341_v16  ;;  %v8674_v54 = vand.u32 4294901760, %v8341_v16 }
 0x4df   : > { %v8256_v46 = vsub.f32 %v3440_v10, %v3486_v62  ;;  %v3668_v10 = vsub.f32 %v8270_v39, %v8604_v44 }
 0x4e0   : > { %6412 = vmatpush3.bf16.msra.mxu1 %v7805_v45  ;;  %v3483_v45 = vand.u32 4294901760, %v3439_v55 }
 0x4e1   : > { %v8606_v58 = vand.u32 4294901760, %v8256_v46  ;;  %v3669_v0 = vand.u32 4294901760, %v3668_v10  ;;  %v3597_v10 = vand.u32 4294901760, %v8326_v31 }
 0x4e2   : > { %v8197_v57 = vpack.c.bf16 %v3486_v62, %v3483_v45  ;;  %v8254_v35 = vsub.f32 %v3439_v55, %v3483_v45  ;;  %v3662_v45 = vand.u32 4294901760, %v3661_v40  ;;  %v3590_v40 = vand.u32 4294901760, %v8321_v30 }
 0x4e3   : > { %5580 = vmatmul.mubr.f32.vlgmr.msra.gmra.mrb[8].mxu1 %v7920_v29  ;;  %v8207_v29 = vpack.c.bf16 %v3492_v8, %v3489_v32  ;;  %v3654_v22 = vsub.f32 %v8256_v46, %v8606_v58  ;;  %v3598_v50 = vsub.f32 %v8326_v31, %v3597_v10 }
 0x4e4   : > { %5582 = vmatprep.mubr.f32.mxu1 %v7951_v12  ;;  %6434 = vmatprep.subr.bf16.mxu0 %v8197_v57  ;;  %v3444_v12 = vld [vmem:[%s8544_s9 + $0x78] sm:$0xff]  ;;  %v8607_v26 = vand.u32 4294901760, %v8254_v35  ;;  %v8308_v63 = vpack.c.bf16 %v8256_v46, %v8254_v35  ;;  %v3591_v37 = vsub.f32 %v8321_v30, %v3590_v40 }
 0x4e5   : > { %6436 = vmatpush3.bf16.msra.mxu0 %v8197_v57  ;;  %v3498_v61 = vand.u32 4294901760, %v3444_v12  ;;  %v3655_v18 = vand.u32 4294901760, %v3654_v22 }
 0x4e6   : > { %6438 = vmatprep.subr.bf16.mxu0 %v8207_v29  ;;  %v3647_v28 = vsub.f32 %v8254_v35, %v8607_v26 }
 0x4e7   : > { %5583 = vmatmul.mubr.f32.gmra.mrb[10].mxu1 %v7949_v17  ;;  %v3443_v17 = vld [vmem:[%s8544_s9 + $0x70] sm:$0xff]  ;;  %v8281_v55 = vsub.f32 %v3444_v12, %v3498_v61 }
 0x4e8   : > { %v3495_v53 = vand.u32 4294901760, %v3443_v17  ;;  %v3648_v59 = vand.u32 4294901760, %v3647_v28  ;;  %v4321_v28 = vld [vmem:[%s8543_s8] ss:$0 sm:$0xff] }
 0x4e9   : > { %6440 = vmatpush3.bf16.msra.mxu0 %v8207_v29  ;;  %v8602_v33 = vand.u32 4294901760, %v8281_v55 }
 0x4ea   : > { %v8229_v24 = vpack.c.bf16 %v3498_v61, %v3495_v53  ;;  %v8274_v38 = vpack.c.bf16 %v3655_v18, %v3648_v59  ;;  %v8279_v36 = vsub.f32 %v3443_v17, %v3495_v53  ;;  %v8294_v17 = vpack.c.bf16 %v3669_v0, %v3662_v45 }
 0x4eb   : > { %v3682_v8 = vsub.f32 %v8281_v55, %v8602_v33 }
 0x4ec   : > { %6442 = vmatprep.subr.bf16.mxu0 %v8229_v24  ;;  %v8603_v62 = vand.u32 4294901760, %v8279_v36  ;;  %v8316_v60 = vpack.c.bf16 %v8281_v55, %v8279_v36 }
 0x4ed   : > { %6444 = vmatpush3.bf16.msra.mxu0 %v8229_v24  ;;  %v3683_v53 = vand.u32 4294901760, %v3682_v8 }
 0x4ee   : > { %6446 = vmatprep.subr.bf16.mxu0 %v8239_v48  ;;  %v3675_v32 = vsub.f32 %v8279_v36, %v8603_v62 }
 0x4f0   : > { %v3676_v12 = vand.u32 4294901760, %v3675_v32 }
 0x4f2   : > { %v8296_v61 = vpack.c.bf16 %v3683_v53, %v3676_v12 }
 0x5b6   : > { %v5581_v22 = vpop.f32.mrb[8].mxu1 }
 0x5b7   : > { %v6621_v59 = vadd.f32 %v5581_v22, %v4321_v28  ;;  %v3403_v18 = vpop.f32.mrb[9].mxu1 }
 0x5b8   : > { %v6622_v45 = vadd.f32 %v4321_v28, %v3403_v18 }
 0x5b9   : > { %v3426_v15 = vmax.f32 %v6621_v59, 0.0 }
 0x5ba   : > { %v3425_v0 = vmax.f32 %v6622_v45, 0.0  ;;  %v5584_v32 = vpop.f32.mrb[10].mxu1  ;;  %v8361_v45 = vsub.f32 %v8061_v11, %v3471_v51  ;;  %v3605_v51 = vsub.f32 %v8336_v27, %v8611_v13 }
 0x5bb   : > { %v8343_v8 = vand.u32 4294901760, %v3426_v15  ;;  %v6623_v12 = vadd.f32 %v5584_v32, %v4321_v28  ;;  %v3415_v53 = vpop.f32.mrb[11].mxu1  ;;  %v8366_v32 = vsub.f32 %v8066_v34, %v3474_v2  ;;  %v3612_v2 = vsub.f32 %v8341_v16, %v8610_v5 }
 0x5bc   : > { %v8351_v23 = vand.u32 4294901760, %v3425_v0  ;;  %v6624_v22 = vadd.f32 %v4321_v28, %v3415_v53  ;;  %v3606_v5 = vand.u32 4294901760, %v3605_v51 }
 0x5bd   : > { %v8356_v59 = vsub.f32 %v3426_v15, %v8343_v8  ;;  %v3428_v18 = vmax.f32 %v6623_v12, 0.0  ;;  %v3592_v15 = vand.u32 4294901760, %v3591_v37  ;;  %v3599_v12 = vand.u32 4294901760, %v3598_v50 }
 0x5be   : > { %v8369_v28 = vsub.f32 %v3425_v0, %v8351_v23  ;;  %v3427_v53 = vmax.f32 %v6624_v22, 0.0  ;;  %v3618_v37 = vand.u32 4294901760, %v8361_v45  ;;  %v3625_v50 = vand.u32 4294901760, %v8366_v32 }
 0x5bf   : > { %v8612_v33 = vand.u32 4294901760, %v8356_v59  ;;  %v8372_v62 = vand.u32 4294901760, %v3428_v18  ;;  %v6449_v58 = vpack.c.bf16 %v3599_v12, %v3592_v15 }
 0x5c0   : > { %v8374_v44 = vand.u32 4294901760, %v3427_v53  ;;  %v3535_v11 = vand.u32 4294901760, %v8369_v28  ;;  %v3626_v15 = vsub.f32 %v8366_v32, %v3625_v50 }
 0x5c1   : > { %v3546_v34 = vsub.f32 %v8356_v59, %v8612_v33  ;;  %v8387_v0 = vsub.f32 %v3428_v18, %v8372_v62  ;;  %v3613_v18 = vand.u32 4294901760, %v3612_v2 }
 0x5c2   : > { %v8392_v22 = vsub.f32 %v3427_v53, %v8374_v44  ;;  %v3536_v42 = vsub.f32 %v8369_v28, %v3535_v11  ;;  %v3619_v53 = vsub.f32 %v8361_v45, %v3618_v37 }
 0x5c3   : > { %v8613_v26 = vand.u32 4294901760, %v8387_v0  ;;  %v3547_v13 = vand.u32 4294901760, %v3546_v34  ;;  %v6453_v2 = vpack.c.bf16 %v3613_v18, %v3606_v5 }
 0x5c4   : > { %v3537_v47 = vand.u32 4294901760, %v3536_v42  ;;  %v3555_v49 = vand.u32 4294901760, %v8392_v22  ;;  %v3620_v34 = vand.u32 4294901760, %v3619_v53 }
 0x5c5   : > { %v3566_v33 = vsub.f32 %v8387_v0, %v8613_v26  ;;  %v3627_v26 = vand.u32 4294901760, %v3626_v15 }
 0x5c6   : > { %5617 = vmatprep.mubr.f32.mxu0 %v3537_v47  ;;  %v3556_v42 = vsub.f32 %v8392_v22, %v3555_v49 }
 0x5c7   : > { %5618 = vmatmul.mubr.f32.vlgmr.msra.gmra.mrb[8].mxu0 %v3547_v13  ;;  %v3567_v51 = vand.u32 4294901760, %v3566_v33  ;;  %v6457_v47 = vpack.c.bf16 %v3627_v26, %v3620_v34  ;;  %v6485_v26 = vpack.c.bf16 %v8341_v16, %v8336_v27  ;;  %v8672_v33 = vand.u32 4294901760, %v8356_v59 }
 0x5c8   : > { %6448 = vmatpush3.bf16.msra.mxu0 %v8239_v48  ;;  %v3557_v12 = vand.u32 4294901760, %v3556_v42  ;;  %v6481_v48 = vpack.c.bf16 %v8326_v31, %v8321_v30  ;;  %v8681_v30 = vand.u32 4294901760, %v8270_v39 }
 0x5c9   : > { %6450 = vmatprep.subr.bf16.mxu0 %v6449_v58 }
 0x5ca   : > { %5620 = vmatprep.mubr.f32.mxu0 %v3557_v12 }
 0x5cb   : > { %5621 = vmatmul.mubr.f32.gmra.mrb[10].mxu0 %v3567_v51 }
 0x5cc   : > { %6452 = vmatpush3.bf16.msra.mxu0 %v6449_v58  ;;  %5655 = vmatprep.mubr.f32.mxu0 %v8351_v23  ;;  %v6489_v58 = vpack.c.bf16 %v8366_v32, %v8361_v45 }
 0x5cd   : > { %6454 = vmatprep.subr.bf16.mxu0 %v6453_v2 }
 0x5d0   : > { %6456 = vmatpush3.bf16.msra.mxu0 %v6453_v2 }
 0x5d1   : > { %6458 = vmatprep.subr.bf16.mxu0 %v6457_v47 }
 0x5d4   : > { %6460 = vmatpush3.bf16.msra.mxu0 %v6457_v47 }
 0x5d5   : > { %6462 = vmatprep.subr.bf16.mxu0 %v8260_v52 }
 0x5d8   : > { %6464 = vmatpush3.bf16.msra.mxu0 %v8260_v52  ;;  %v6541_v52 = vpack.c.bf16 %v3583_v41, %v3576_v6  ;;  %v6549_v6 = vpack.c.bf16 %v8674_v54, %v8673_v9  ;;  %v8675_v41 = vand.u32 4294901760, %v8387_v0 }
 0x5d9   : > { %6466 = vmatprep.subr.bf16.mxu0 %v8274_v38 }
 0x5dc   : > { %6468 = vmatpush3.bf16.msra.mxu0 %v8274_v38  ;;  %v6545_v38 = vpack.c.bf16 %v3597_v10, %v3590_v40 }
 0x5dd   : > { %6470 = vmatprep.subr.bf16.mxu0 %v8294_v17 }
 0x5e0   : > { %6472 = vmatpush3.bf16.msra.mxu0 %v8294_v17  ;;  %v6553_v17 = vpack.c.bf16 %v3625_v50, %v3618_v37 }
 0x5e1   : > { %6474 = vmatprep.subr.bf16.mxu0 %v8296_v61 }
 0x5e4   : > { %6476 = vmatpush3.bf16.msra.mxu0 %v8296_v61  ;;  %v8677_v61 = vand.u32 4294901760, %v8244_v3  ;;  %v8683_v3 = vand.u32 4294901760, %v8281_v55 }
 0x5e5   : > { %6478 = vmatprep.subr.bf16.mxu0 %v8300_v20 }
 0x5e7   : > { %5656 = vmatmul.mubr.f32.vlgmr.msra.gmra.mrb[8].mxu0 %v8343_v8 }
 0x5e8   : > { %5658 = vmatprep.mubr.f32.mxu0 %v8374_v44  ;;  %6480 = vmatpush3.bf16.msra.mxu0 %v8300_v20 }
 0x5e9   : > { %6482 = vmatprep.subr.bf16.mxu0 %v6481_v48 }
 0x5eb   : > { %5659 = vmatmul.mubr.f32.gmra.mrb[10].mxu0 %v8372_v62 }
 0x5ec   : > { %6484 = vmatpush3.bf16.msra.mxu0 %v6481_v48  ;;  %5693 = vmatprep.mubr.f32.mxu0 %v8369_v28 }
 0x5ed   : > { %6486 = vmatprep.subr.bf16.mxu0 %v6485_v26 }
 0x5f0   : > { %6488 = vmatpush3.bf16.msra.mxu0 %v6485_v26 }
 0x5f1   : > { %6490 = vmatprep.subr.bf16.mxu0 %v6489_v58 }
 0x5f4   : > { %6492 = vmatpush3.bf16.msra.mxu0 %v6489_v58 }
 0x5f5   : > { %6494 = vmatprep.subr.bf16.mxu0 %v8304_v21 }
 0x5f8   : > { %6496 = vmatpush3.bf16.msra.mxu0 %v8304_v21  ;;  %v8678_v21 = vand.u32 4294901760, %v8254_v35 }
 0x5f9   : > { %6498 = vmatprep.subr.bf16.mxu0 %v8308_v63 }
 0x5fc   : > { %6500 = vmatpush3.bf16.msra.mxu0 %v8308_v63  ;;  %v8679_v63 = vand.u32 4294901760, %v8256_v46 }
 0x5fd   : > { %6502 = vmatprep.subr.bf16.mxu0 %v8312_v25 }
 0x600   : > { %6504 = vmatpush3.bf16.msra.mxu0 %v8312_v25  ;;  %v6561_v25 = vpack.c.bf16 %v8679_v63, %v8678_v21 }
 0x601   : > { %6506 = vmatprep.subr.bf16.mxu0 %v8316_v60 }
 0x604   : > { %6508 = vmatpush3.bf16.msra.mxu0 %v8316_v60  ;;  %v8680_v60 = vand.u32 4294901760, %v8268_v43 }
 0x605   : > { %6510 = vmatprep.subr.bf16.mxu0 %v8048_v19 }
 0x606   : > { %v6565_v31 = vpack.c.bf16 %v8681_v30, %v8680_v60 }
 0x607   : > { %5694 = vmatmul.mubr.f32.vlgmr.msra.gmra.mrb[8].mxu0 %v8356_v59 }
 0x608   : > { %5696 = vmatprep.mubr.f32.mxu0 %v8392_v22  ;;  %6512 = vmatpush3.bf16.msra.mxu0 %v8048_v19 }
 0x609   : > { %6514 = vmatprep.subr.bf16.mxu0 %v8056_v14 }
 0x60b   : > { %5697 = vmatmul.mubr.f32.gmra.mrb[10].mxu0 %v8387_v0 }
 0x60c   : > { %6516 = vmatpush3.bf16.msra.mxu0 %v8056_v14  ;;  %5731 = vmatprep.mubr.f32.mxu0 %v3535_v11 }
 0x60d   : > { %6518 = vmatprep.subr.bf16.mxu0 %v8075_v56 }
 0x610   : > { %6520 = vmatpush3.bf16.msra.mxu0 %v8075_v56 }
 0x611   : > { %6522 = vmatprep.subr.bf16.mxu0 %v8086_v7 }
 0x614   : > { %6524 = vmatpush3.bf16.msra.mxu0 %v8086_v7 }
 0x615   : > { %6526 = vmatprep.subr.bf16.mxu0 %v8187_v1 }
 0x618   : > { %6528 = vmatpush3.bf16.msra.mxu0 %v8187_v1 }
 0x619   : > { %6530 = vmatprep.subr.bf16.mxu0 %v8197_v57 }
 0x61c   : > { %6532 = vmatpush3.bf16.msra.mxu0 %v8197_v57 }
 0x61d   : > { %6534 = vmatprep.subr.bf16.mxu0 %v8207_v29 }
 0x620   : > { %6536 = vmatpush3.bf16.msra.mxu0 %v8207_v29 }
 0x621   : > { %6538 = vmatprep.subr.bf16.mxu0 %v8229_v24 }
 0x624   : > { %6540 = vmatpush3.bf16.msra.mxu0 %v8229_v24 }
 0x625   : > { %6542 = vmatprep.subr.bf16.mxu0 %v6541_v52 }
 0x627   : > { %5732 = vmatmul.mubr.f32.vlgmr.msra.gmra.mrb[8].mxu0 %v8672_v33 }
 0x628   : > { %5734 = vmatprep.mubr.f32.mxu0 %v3555_v49  ;;  %6544 = vmatpush3.bf16.msra.mxu0 %v6541_v52  ;;  %v8676_v49 = vand.u32 4294901760, %v8242_v4  ;;  %v8682_v4 = vand.u32 4294901760, %v8279_v36 }
 0x629   : > { %6546 = vmatprep.subr.bf16.mxu0 %v6545_v38 }
 0x62a   : > { %v6557_v20 = vpack.c.bf16 %v8677_v61, %v8676_v49  ;;  %v6569_v40 = vpack.c.bf16 %v8683_v3, %v8682_v4 }
 0x62b   : > { %5735 = vmatmul.mubr.f32.gmra.mrb[10].mxu0 %v8675_v41 }
 0x62c   : > { %6548 = vmatpush3.bf16.msra.mxu0 %v6545_v38  ;;  %5769 = vmatprep.mubr.f32.mxu0 %v8351_v23 }
 0x62d   : > { %6550 = vmatprep.subr.bf16.mxu0 %v6549_v6 }
 0x630   : > { %6552 = vmatpush3.bf16.msra.mxu0 %v6549_v6 }
 0x631   : > { %6554 = vmatprep.subr.bf16.mxu0 %v6553_v17 }
 0x634   : > { %6556 = vmatpush3.bf16.msra.mxu0 %v6553_v17 }
 0x635   : > { %6558 = vmatprep.subr.bf16.mxu0 %v6557_v20 }
 0x638   : > { %6560 = vmatpush3.bf16.msra.mxu0 %v6557_v20 }
 0x639   : > { %6562 = vmatprep.subr.bf16.mxu0 %v6561_v25 }
 0x63c   : > { %6564 = vmatpush3.bf16.msra.mxu0 %v6561_v25 }
 0x63d   : > { %6566 = vmatprep.subr.bf16.mxu0 %v6565_v31 }
 0x640   : > { %6568 = vmatpush3.bf16.msra.mxu0 %v6565_v31 }
 0x641   : > { %6570 = vmatprep.subr.bf16.mxu0 %v6569_v40 }
 0x644   : > { %6572 = vmatpush3.bf16.msra.mxu0 %v6569_v40 }
 0x645   : > { %6574 = vmatprep.subr.bf16.mxu0 %v8048_v19 }
 0x647   : > { %5770 = vmatmul.mubr.f32.vlgmr.msra.gmra.mrb[8].mxu0 %v8343_v8 }
 0x648   : > { %5772 = vmatprep.mubr.f32.mxu0 %v8374_v44  ;;  %6576 = vmatpush3.bf16.msra.mxu0 %v8048_v19  ;;  %v4322_v19 = vld [vmem:[%s8545_s10] ss:$0 sm:$0xff] }
 0x649   : > { %6578 = vmatprep.subr.bf16.mxu0 %v8056_v14 }
 0x64b   : > { %5773 = vmatmul.mubr.f32.gmra.mrb[10].mxu0 %v8372_v62 }
 0x64c   : > { %6580 = vmatpush3.bf16.msra.mxu0 %v8056_v14  ;;  %5807 = vmatprep.mubr.f32.mxu0 %v8351_v23 }
 0x64d   : > { %6582 = vmatprep.subr.bf16.mxu0 %v8075_v56 }
 0x650   : > { %6584 = vmatpush3.bf16.msra.mxu0 %v8075_v56 }
 0x651   : > { %6586 = vmatprep.subr.bf16.mxu0 %v8086_v7 }
 0x654   : > { %6588 = vmatpush3.bf16.msra.mxu0 %v8086_v7 }
 0x655   : > { %6590 = vmatprep.subr.bf16.mxu0 %v8187_v1 }
 0x658   : > { %6592 = vmatpush3.bf16.msra.mxu0 %v8187_v1 }
 0x659   : > { %6594 = vmatprep.subr.bf16.mxu0 %v8197_v57 }
 0x65c   : > { %6596 = vmatpush3.bf16.msra.mxu0 %v8197_v57 }
 0x65d   : > { %6598 = vmatprep.subr.bf16.mxu0 %v8207_v29 }
 0x660   : > { %6600 = vmatpush3.bf16.msra.mxu0 %v8207_v29 }
 0x661   : > { %6602 = vmatprep.subr.bf16.mxu0 %v8229_v24 }
 0x664   : > { %6604 = vmatpush3.bf16.msra.mxu0 %v8229_v24 }
 0x667   : > { %5808 = vmatmul.mubr.f32.vlgmr.msra.gmra.mrb[8].mxu0 %v8343_v8 }
 0x668   : > { %5810 = vmatprep.mubr.f32.mxu0 %v8374_v44 }
 0x66b   : > { %5811 = vmatmul.mubr.f32.gmra.mrb[10].mxu0 %v8372_v62 }
 0x73a   : > { %v5809_v14 = vpop.f32.mrb[8].mxu0 }
 0x73b   : > { %v4200_v56 = vpop.f32.mrb[9].mxu0  ;;  %v6625_v1 = vadd.f32 %v5809_v14, %v4322_v19 }
 0x73c   : > { %v6626_v7 = vadd.f32 %v4322_v19, %v4200_v56 }
 0x73d   : > { %4224 = vst.msk [vmem:[%s418_s23 + $0x8] sm:$0xff] %vm4222_vm1, %v6625_v1 }
 0x73e   : > { %4223 = vst.msk [vmem:[%s418_s23] sm:$0xff] %vm4222_vm1, %v6626_v7  ;;  %v5812_v57 = vpop.f32.mrb[10].mxu0 }
 0x73f   : > { %v4212_v29 = vpop.f32.mrb[11].mxu0  ;;  %v6627_v35 = vadd.f32 %v5812_v57, %v4322_v19 }
 0x740   : > { %v6628_v24 = vadd.f32 %v4322_v19, %v4212_v29 }
 0x741   : > { %4226 = vst.msk [vmem:[%s418_s23 + $0x18] sm:$0xff] %vm4222_vm1, %v6627_v35 }
 0x742   : > { %4225 = vst.msk [vmem:[%s418_s23 + $0x10] sm:$0xff] %vm4222_vm1, %v6628_v24 }
 0x743 PF: > { %s23_s17 = sadd.s32 1, %s6826_s17  }
 0x744   : > { %p20_p5 = scmp.ge.s32.totalorder %s23_s17, 4  }
 0x746   :  { %22 = sbr.rel (!%p20_p5) target bundleno = 2 (0x2), region = 103 }
 0x74d   :  { %4249 = vsyncpa [#allocation3], 1 }
 0x74e   :  { %4251 = vsyncpa [#allocation3 + $0x1], 1 }
 0x74f   :  { %4252 = vsyncpa [#allocation5], 1 }

</bundles_post_ra>
